<compile_context>
chip_gen: v7x
topology: tpu7x:2x2x1
jax: 0.10.0
libtpu: 0.0.40
codegen_flags: <defaults>
</compile_context>

<pallas_src>
import math

import jax
import jax.numpy as jnp
from jax.experimental import pallas as pl
from jax.experimental.pallas import tpu as pltpu

# ----------------------------- configuration -------------------------------
N      = 128   # number of nodes
NFEAT  = 32    # dataset.num_features
HID    = 32    # args.hidden
NCLASS = 8     # dataset.num_classes
K      = 3     # args.K
ALPHA  = 0.1   # args.alpha
NLAYER = 2     # args.nlayer
M      = 64    # eigen-basis size of each spectral component (e[i].size(0))
LN_EPS = 1e-5  # torch.nn.LayerNorm default eps

VMEM = pl.BlockSpec(memory_space=pltpu.MemorySpace.VMEM)
SMEM = pl.BlockSpec(memory_space=pltpu.MemorySpace.SMEM)


# --------------------------- fused forward kernel ----------------------------
def mfnn_fused_kernel(xT_ref, w1_ref, b1_ref, w2_ref, b2_ref,
                      ne0_ref, u0_ref, u0T_ref,
                      ne1_ref, u1_ref, u1T_ref,
                      lw_ref, gamma_ref, beta_ref,
                      av_ref, w3_ref, b3_ref,
                      fw_ref, attv_ref,
                      out_ref):
    f32 = jnp.float32

    # ---- feat_encoder:  hT = W2 @ relu(W1 @ xT + b1) + b2    (dropouts = identity)
    h1 = jnp.dot(w1_ref[...], xT_ref[...], preferred_element_type=f32) + b1_ref[...]
    h1 = jnp.maximum(h1, 0.0)
    hT = jnp.dot(w2_ref[...], h1, preferred_element_type=f32) + b2_ref[...]
    r0 = hT                                                    # result[0], (HID, N)

    fw0 = fw_ref[0]        # fW[0]
    fwsum = fw_ref[1]      # fW[1] + ... + fW[K]   (K-loop hoist, exact)

    comp_out = []
    for ne_ref, u_ref, uT_ref in ((ne0_ref, u0_ref, u0T_ref),
                                  (ne1_ref, u1_ref, u1T_ref)):
        new_eT = ne_ref[...]                                   # (1, M)
        for l in range(NLAYER):
            # spectral propagation (r is loop-invariant in the reference K-loop)
            utxT = jnp.dot(hT, u_ref[...], preferred_element_type=f32)            # (HID, M)
            rT = jnp.dot(new_eT * utxT, uT_ref[...], preferred_element_type=f32)  # (HID, N)
            hiddenT = hT * fw0 + fwsum * rT
            # MFNNLayer: weighted basis sum + LayerNorm(features) + ReLU
            s = (hT * lw_ref[:, 2 * l:2 * l + 1]
                 + hiddenT * lw_ref[:, 2 * l + 1:2 * l + 2])                       # (HID, N)
            mu = jnp.mean(s, axis=0, keepdims=True)                                # (1, N)
            var = jnp.mean(jnp.square(s - mu), axis=0, keepdims=True)
            xn = (s - mu) * jax.lax.rsqrt(var + LN_EPS)
            hT = jnp.maximum(xn * gamma_ref[:, l:l + 1] + beta_ref[:, l:l + 1], 0.0)
        comp_out.append(hT)
    r1, r2 = comp_out

    # ---- attention3 over {result[0], result[1], result[2]}
    s0 = jax.nn.sigmoid(jnp.sum(r0 * av_ref[:, 0:1], axis=0, keepdims=True))       # (1, N)
    s1 = jax.nn.sigmoid(jnp.sum(r1 * av_ref[:, 1:2], axis=0, keepdims=True))
    s2 = jax.nn.sigmoid(jnp.sum(r2 * av_ref[:, 2:3], axis=0, keepdims=True))
    l0 = s0 * attv_ref[0, 0] + s1 * attv_ref[1, 0] + s2 * attv_ref[2, 0]
    l1 = s0 * attv_ref[0, 1] + s1 * attv_ref[1, 1] + s2 * attv_ref[2, 1]
    l2 = s0 * attv_ref[0, 2] + s1 * attv_ref[1, 2] + s2 * attv_ref[2, 2]
    mx = jnp.maximum(jnp.maximum(l0, l1), l2)
    e0 = jnp.exp(l0 - mx)
    e1 = jnp.exp(l1 - mx)
    e2 = jnp.exp(l2 - mx)
    den = e0 + e1 + e2
    hc = (e0 / den) * r0 + (e1 / den) * r1 + (e2 / den) * r2                       # (HID, N)

    # ---- lin3 + log_softmax over classes (sublane axis)
    y = jnp.dot(w3_ref[...], hc, preferred_element_type=f32) + b3_ref[...]         # (NCLASS, N)
    my = jnp.max(y, axis=0, keepdims=True)
    ys = y - my
    out_ref[...] = ys - jnp.log(jnp.sum(jnp.exp(ys), axis=0, keepdims=True))


# ------------------------------ JAX wrappers ---------------------------------
def fourier_encoding(e, eig_w, eig_b):
    """FourierEncoding.forward: eig_w([1, cos(1*pi*e), ..., cos(hid*pi*e)]) -> (M, 1)."""
    coefs = jnp.arange(1, HID + 1, dtype=jnp.float32) * math.pi
    feats = jnp.concatenate([jnp.ones((e.shape[0], 1), jnp.float32),
                             jnp.cos(e[:, None] * coefs[None, :])], axis=1)   # (M, HID+1)
    return feats @ eig_w.T + eig_b                                            # (M, 1)


@jax.jit
def mfnn_forward(params, x, e_list, u_list):
    # eig_encoder: tiny (M, HID+1) matvec, plain-JAX preprocessing feeding the kernel
    ne = [fourier_encoding(e_i, params["eig_w"], params["eig_b"]).T            # (1, M)
          for e_i in e_list]
    u0, u1 = u_list
    outT = pl.pallas_call(
        mfnn_fused_kernel,
        out_shape=jax.ShapeDtypeStruct((NCLASS, N), jnp.float32),   # lane-dense (8, 128)
        in_specs=[VMEM] * 17 + [SMEM, SMEM],
        out_specs=VMEM,
    )(x.T, params["w1"], params["b1"], params["w2"], params["b2"],
      ne[0], u0, u0.T, ne[1], u1, u1.T,
      params["lw"], params["gamma"], params["beta"],
      params["av"], params["w3"], params["b3"],
      params["fw2"], params["attv"])
    return outT.T                                                   # (N, NCLASS)


# -------------------------------- parameters ---------------------------------
def make_params(key):
    ks = jax.random.split(key, 16)
    uni = lambda k, shape, s: jax.random.uniform(k, shape, jnp.float32, -s, s)
    p = {}
    # feat_encoder = Linear(NFEAT,HID) -> ReLU -> Linear(HID,HID)
    p["w1"] = uni(ks[0], (HID, NFEAT), 1.0 / math.sqrt(NFEAT))
    p["b1"] = uni(ks[1], (HID, 1), 1.0 / math.sqrt(NFEAT))
    p["w2"] = uni(ks[2], (HID, HID), 1.0 / math.sqrt(HID))
    p["b2"] = uni(ks[3], (HID, 1), 1.0 / math.sqrt(HID))
    # eig_encoder = FourierEncoding(HID): eig_w = Linear(HID+1, 1)
    p["eig_w"] = uni(ks[4], (1, HID + 1), 1.0 / math.sqrt(HID + 1))
    p["eig_b"] = uni(ks[5], (1,), 1.0 / math.sqrt(HID + 1))
    # MFNNLayer weights (1,2,HID) ~ N(0,0.01); LayerNorm gamma=1, beta=0
    lw = 0.01 * jax.random.normal(ks[6], (NLAYER, 2, HID), jnp.float32)
    p["lw"] = jnp.transpose(lw, (2, 0, 1)).reshape(HID, 2 * NLAYER)  # col 2l+j = layer l, basis j
    p["gamma"] = jnp.ones((HID, NLAYER), jnp.float32)
    p["beta"] = jnp.zeros((HID, NLAYER), jnp.float32)
    # fW: fW[k] = alpha*(1-alpha)**k, then fW[-1] = (1-alpha)**K
    fw = jnp.array([ALPHA * (1.0 - ALPHA) ** k for k in range(K + 1)], jnp.float32)
    fw = fw.at[-1].set((1.0 - ALPHA) ** K)
    p["fW_full"] = fw
    p["fw2"] = jnp.stack([fw[0], jnp.sum(fw[1:])])                   # [fW0, sum(fW[1:])]
    # attention vectors: att_vec_j (HID,1) uniform(+-1); att_vec (3,3) uniform(+-1/sqrt(3))
    p["av"] = jnp.concatenate([uni(ks[7], (HID, 1), 1.0),
                               uni(ks[8], (HID, 1), 1.0),
                               uni(ks[9], (HID, 1), 1.0)], axis=1)
    p["attv"] = uni(ks[10], (3, 3), 1.0 / math.sqrt(3.0))
    # lin3 = Linear(HID, NCLASS)
    p["w3"] = uni(ks[11], (NCLASS, HID), 1.0 / math.sqrt(HID))
    p["b3"] = uni(ks[12], (NCLASS, 1), 1.0 / math.sqrt(HID))
    return p


# ---------------------- pure-JAX reference (un-hoisted) -----------------------
def reference_forward(params, x, e_list, u_list):
    hp = jax.lax.Precision.HIGHEST
    dot = lambda a, b: jnp.dot(a, b, precision=hp)
    h = jnp.maximum(dot(x, params["w1"].T) + params["b1"][:, 0], 0.0)
    h = dot(h, params["w2"].T) + params["b2"][:, 0]
    result = [h]
    fW = params["fW_full"]
    for e_i, u_i in zip(e_list, u_list):
        coefs = jnp.arange(1, HID + 1, dtype=jnp.float32) * math.pi
        feats = jnp.concatenate([jnp.ones((e_i.shape[0], 1), jnp.float32),
                                 jnp.cos(e_i[:, None] * coefs[None, :])], axis=1)
        new_e = dot(feats, params["eig_w"].T) + params["eig_b"]          # (M, 1)
        ut = u_i.T
        for l in range(NLAYER):
            utx = dot(ut, h)
            hidden = h * fW[0]
            for k in range(K):                                           # reference keeps k loop
                r = dot(u_i, new_e * utx)
                hidden = hidden + fW[k + 1] * r
            s = h * params["lw"][:, 2 * l] + hidden * params["lw"][:, 2 * l + 1]
            mu = jnp.mean(s, axis=-1, keepdims=True)
            var = jnp.mean(jnp.square(s - mu), axis=-1, keepdims=True)
            h = jnp.maximum((s - mu) * jax.lax.rsqrt(var + LN_EPS)
                            * params["gamma"][:, l] + params["beta"][:, l], 0.0)
        result.append(h)
    r0, r1, r2 = result
    scores = jnp.concatenate([dot(r0, params["av"][:, 0:1]),
                              dot(r1, params["av"][:, 1:2]),
                              dot(r2, params["av"][:, 2:3])], axis=1)
    logits = dot(jax.nn.sigmoid(scores), params["attv"])
    att = jax.nn.softmax(logits, axis=1)
    hc = att[:, 0:1] * r0 + att[:, 1:2] * r1 + att[:, 2:3] * r2
    y = dot(hc, params["w3"].T) + params["b3"][:, 0]
    return jax.nn.log_softmax(y, axis=1)


# ----------------------------------- main -------------------------------------
if __name__ == "__main__":
    key = jax.random.PRNGKey(0)
    k_p, k_x, k_e0, k_e1, k_u0, k_u1 = jax.random.split(key, 6)

    params = make_params(k_p)
    x = jax.random.normal(k_x, (N, NFEAT), jnp.float32)
    e_list = [jax.random.uniform(k_e0, (M,), jnp.float32, 0.0, 2.0),
              jax.random.uniform(k_e1, (M,), jnp.float32, 0.0, 2.0)]
    u_list = [jax.random.normal(k_u0, (N, M), jnp.float32) / math.sqrt(N),
              jax.random.normal(k_u1, (N, M), jnp.float32) / math.sqrt(N)]

    out = mfnn_forward(params, x, e_list, u_list)
    out = jax.block_until_ready(out)

    assert out.shape == (N, NCLASS)
    assert bool(jnp.all(jnp.isfinite(out)))
    # rows of exp(log_softmax) must sum to 1
    assert bool(jnp.allclose(jnp.sum(jnp.exp(out), axis=1), 1.0, atol=1e-4))
    # numerical check against a pure-JAX port of the PyTorch forward
    ref = reference_forward(params, x, e_list, u_list)
    assert bool(jnp.allclose(out, ref, atol=2e-3, rtol=2e-3)), \
        float(jnp.max(jnp.abs(out - ref)))
    print("KERNEL_OK")
</pallas_src>

<mosaic_0001>
module attributes {stable_mosaic.version = 11 : i64} {
  func.func @mfnn_fused_kernel(%arg0: memref<32x128xf32, #tpu.memory_space<vmem>>, %arg1: memref<32x32xf32, #tpu.memory_space<vmem>>, %arg2: memref<32x1xf32, #tpu.memory_space<vmem>>, %arg3: memref<32x32xf32, #tpu.memory_space<vmem>>, %arg4: memref<32x1xf32, #tpu.memory_space<vmem>>, %arg5: memref<1x64xf32, #tpu.memory_space<vmem>>, %arg6: memref<128x64xf32, #tpu.memory_space<vmem>>, %arg7: memref<64x128xf32, #tpu.memory_space<vmem>>, %arg8: memref<1x64xf32, #tpu.memory_space<vmem>>, %arg9: memref<128x64xf32, #tpu.memory_space<vmem>>, %arg10: memref<64x128xf32, #tpu.memory_space<vmem>>, %arg11: memref<32x4xf32, #tpu.memory_space<vmem>>, %arg12: memref<32x2xf32, #tpu.memory_space<vmem>>, %arg13: memref<32x2xf32, #tpu.memory_space<vmem>>, %arg14: memref<32x3xf32, #tpu.memory_space<vmem>>, %arg15: memref<8x32xf32, #tpu.memory_space<vmem>>, %arg16: memref<8x1xf32, #tpu.memory_space<vmem>>, %arg17: memref<2xf32, #tpu.memory_space<smem>>, %arg18: memref<3x3xf32, #tpu.memory_space<smem>>, %arg19: memref<8x128xf32, #tpu.memory_space<vmem>>) attributes {dimension_semantics = [], scalar_prefetch = 0 : i64, scratch_operands = 0 : i64, tpu.core_type = #tpu.core_type<tc>} {
    %c0 = arith.constant 0 : index
    %c0_0 = arith.constant 0 : index
    %0 = vector.load %arg1[%c0, %c0_0] : memref<32x32xf32, #tpu.memory_space<vmem>>, vector<32x32xf32>
    %c0_1 = arith.constant 0 : index
    %c0_2 = arith.constant 0 : index
    %1 = vector.load %arg0[%c0_1, %c0_2] : memref<32x128xf32, #tpu.memory_space<vmem>>, vector<32x128xf32>
    %cst = arith.constant dense<0.000000e+00> : vector<32x128xf32>
    %2 = tpu.matmul %0, %1, %cst {dimension_numbers = #tpu.dot_dimension_numbers<[1], [0], [0], [1], [0, 0, 1, 1], [], []>} : vector<32x32xf32>, vector<32x128xf32>, vector<32x128xf32> -> vector<32x128xf32>
    %c0_3 = arith.constant 0 : index
    %c0_4 = arith.constant 0 : index
    %3 = vector.load %arg2[%c0_3, %c0_4] : memref<32x1xf32, #tpu.memory_space<vmem>>, vector<32x1xf32>
    %4 = vector.broadcast %3 : vector<32x1xf32> to vector<32x128xf32>
    %5 = arith.addf %2, %4 : vector<32x128xf32>
    %cst_5 = arith.constant 0.000000e+00 : f32
    %6 = vector.broadcast %cst_5 : f32 to vector<32x128xf32>
    %7 = arith.maximumf %5, %6 : vector<32x128xf32>
    %c0_6 = arith.constant 0 : index
    %c0_7 = arith.constant 0 : index
    %8 = vector.load %arg3[%c0_6, %c0_7] : memref<32x32xf32, #tpu.memory_space<vmem>>, vector<32x32xf32>
    %cst_8 = arith.constant dense<0.000000e+00> : vector<32x128xf32>
    %9 = tpu.matmul %8, %7, %cst_8 {dimension_numbers = #tpu.dot_dimension_numbers<[1], [0], [0], [1], [0, 0, 1, 1], [], []>} : vector<32x32xf32>, vector<32x128xf32>, vector<32x128xf32> -> vector<32x128xf32>
    %c0_9 = arith.constant 0 : index
    %c0_10 = arith.constant 0 : index
    %10 = vector.load %arg4[%c0_9, %c0_10] : memref<32x1xf32, #tpu.memory_space<vmem>>, vector<32x1xf32>
    %11 = vector.broadcast %10 : vector<32x1xf32> to vector<32x128xf32>
    %12 = arith.addf %9, %11 : vector<32x128xf32>
    %c0_11 = arith.constant 0 : index
    %13 = memref.load %arg17[%c0_11] : memref<2xf32, #tpu.memory_space<smem>>
    %c1 = arith.constant 1 : index
    %14 = memref.load %arg17[%c1] : memref<2xf32, #tpu.memory_space<smem>>
    %c0_12 = arith.constant 0 : index
    %c0_13 = arith.constant 0 : index
    %15 = vector.load %arg5[%c0_12, %c0_13] : memref<1x64xf32, #tpu.memory_space<vmem>>, vector<1x64xf32>
    %c0_14 = arith.constant 0 : index
    %c0_15 = arith.constant 0 : index
    %16 = vector.load %arg6[%c0_14, %c0_15] : memref<128x64xf32, #tpu.memory_space<vmem>>, vector<128x64xf32>
    %cst_16 = arith.constant dense<0.000000e+00> : vector<32x64xf32>
    %17 = tpu.matmul %12, %16, %cst_16 {dimension_numbers = #tpu.dot_dimension_numbers<[1], [0], [0], [1], [0, 0, 1, 1], [], []>} : vector<32x128xf32>, vector<128x64xf32>, vector<32x64xf32> -> vector<32x64xf32>
    %18 = vector.broadcast %15 : vector<1x64xf32> to vector<32x64xf32>
    %19 = arith.mulf %18, %17 : vector<32x64xf32>
    %c0_17 = arith.constant 0 : index
    %c0_18 = arith.constant 0 : index
    %20 = vector.load %arg7[%c0_17, %c0_18] : memref<64x128xf32, #tpu.memory_space<vmem>>, vector<64x128xf32>
    %cst_19 = arith.constant dense<0.000000e+00> : vector<32x128xf32>
    %21 = tpu.matmul %19, %20, %cst_19 {dimension_numbers = #tpu.dot_dimension_numbers<[1], [0], [0], [1], [0, 0, 1, 1], [], []>} : vector<32x64xf32>, vector<64x128xf32>, vector<32x128xf32> -> vector<32x128xf32>
    %22 = vector.broadcast %13 : f32 to vector<32x128xf32>
    %23 = arith.mulf %12, %22 : vector<32x128xf32>
    %24 = vector.broadcast %14 : f32 to vector<32x128xf32>
    %25 = arith.mulf %24, %21 : vector<32x128xf32>
    %26 = arith.addf %23, %25 : vector<32x128xf32>
    %c0_20 = arith.constant 0 : index
    %c0_21 = arith.constant 0 : index
    %27 = vector.load %arg11[%c0_20, %c0_21] : memref<32x4xf32, #tpu.memory_space<vmem>>, vector<32x1xf32>
    %28 = vector.broadcast %27 : vector<32x1xf32> to vector<32x128xf32>
    %29 = arith.mulf %12, %28 : vector<32x128xf32>
    %c0_22 = arith.constant 0 : index
    %c1_23 = arith.constant 1 : index
    %30 = vector.load %arg11[%c0_22, %c1_23] : memref<32x4xf32, #tpu.memory_space<vmem>>, vector<32x1xf32>
    %31 = vector.broadcast %30 : vector<32x1xf32> to vector<32x128xf32>
    %32 = arith.mulf %26, %31 : vector<32x128xf32>
    %33 = arith.addf %29, %32 : vector<32x128xf32>
    %cst_24 = arith.constant dense<0.000000e+00> : vector<128xf32>
    %34 = vector.multi_reduction <add>, %33, %cst_24 [0] : vector<32x128xf32> to vector<128xf32>
    %35 = vector.shape_cast %34 : vector<128xf32> to vector<1x128xf32>
    %cst_25 = arith.constant 3.200000e+01 : f32
    %36 = vector.broadcast %cst_25 : f32 to vector<1x128xf32>
    %37 = arith.divf %35, %36 : vector<1x128xf32>
    %38 = vector.broadcast %37 : vector<1x128xf32> to vector<32x128xf32>
    %39 = arith.subf %33, %38 : vector<32x128xf32>
    %40 = arith.mulf %39, %39 : vector<32x128xf32>
    %cst_26 = arith.constant dense<0.000000e+00> : vector<128xf32>
    %41 = vector.multi_reduction <add>, %40, %cst_26 [0] : vector<32x128xf32> to vector<128xf32>
    %42 = vector.shape_cast %41 : vector<128xf32> to vector<1x128xf32>
    %cst_27 = arith.constant 3.200000e+01 : f32
    %43 = vector.broadcast %cst_27 : f32 to vector<1x128xf32>
    %44 = arith.divf %42, %43 : vector<1x128xf32>
    %45 = vector.broadcast %37 : vector<1x128xf32> to vector<32x128xf32>
    %46 = arith.subf %33, %45 : vector<32x128xf32>
    %cst_28 = arith.constant 9.99999974E-6 : f32
    %47 = vector.broadcast %cst_28 : f32 to vector<1x128xf32>
    %48 = arith.addf %44, %47 : vector<1x128xf32>
    %49 = math.rsqrt %48 : vector<1x128xf32>
    %50 = vector.broadcast %49 : vector<1x128xf32> to vector<32x128xf32>
    %51 = arith.mulf %46, %50 : vector<32x128xf32>
    %c0_29 = arith.constant 0 : index
    %c0_30 = arith.constant 0 : index
    %52 = vector.load %arg12[%c0_29, %c0_30] : memref<32x2xf32, #tpu.memory_space<vmem>>, vector<32x1xf32>
    %53 = vector.broadcast %52 : vector<32x1xf32> to vector<32x128xf32>
    %54 = arith.mulf %51, %53 : vector<32x128xf32>
    %c0_31 = arith.constant 0 : index
    %c0_32 = arith.constant 0 : index
    %55 = vector.load %arg13[%c0_31, %c0_32] : memref<32x2xf32, #tpu.memory_space<vmem>>, vector<32x1xf32>
    %56 = vector.broadcast %55 : vector<32x1xf32> to vector<32x128xf32>
    %57 = arith.addf %54, %56 : vector<32x128xf32>
    %cst_33 = arith.constant 0.000000e+00 : f32
    %58 = vector.broadcast %cst_33 : f32 to vector<32x128xf32>
    %59 = arith.maximumf %57, %58 : vector<32x128xf32>
    %c0_34 = arith.constant 0 : index
    %c0_35 = arith.constant 0 : index
    %60 = vector.load %arg6[%c0_34, %c0_35] : memref<128x64xf32, #tpu.memory_space<vmem>>, vector<128x64xf32>
    %cst_36 = arith.constant dense<0.000000e+00> : vector<32x64xf32>
    %61 = tpu.matmul %59, %60, %cst_36 {dimension_numbers = #tpu.dot_dimension_numbers<[1], [0], [0], [1], [0, 0, 1, 1], [], []>} : vector<32x128xf32>, vector<128x64xf32>, vector<32x64xf32> -> vector<32x64xf32>
    %62 = vector.broadcast %15 : vector<1x64xf32> to vector<32x64xf32>
    %63 = arith.mulf %62, %61 : vector<32x64xf32>
    %c0_37 = arith.constant 0 : index
    %c0_38 = arith.constant 0 : index
    %64 = vector.load %arg7[%c0_37, %c0_38] : memref<64x128xf32, #tpu.memory_space<vmem>>, vector<64x128xf32>
    %cst_39 = arith.constant dense<0.000000e+00> : vector<32x128xf32>
    %65 = tpu.matmul %63, %64, %cst_39 {dimension_numbers = #tpu.dot_dimension_numbers<[1], [0], [0], [1], [0, 0, 1, 1], [], []>} : vector<32x64xf32>, vector<64x128xf32>, vector<32x128xf32> -> vector<32x128xf32>
    %66 = vector.broadcast %13 : f32 to vector<32x128xf32>
    %67 = arith.mulf %59, %66 : vector<32x128xf32>
    %68 = vector.broadcast %14 : f32 to vector<32x128xf32>
    %69 = arith.mulf %68, %65 : vector<32x128xf32>
    %70 = arith.addf %67, %69 : vector<32x128xf32>
    %c0_40 = arith.constant 0 : index
    %c2 = arith.constant 2 : index
    %71 = vector.load %arg11[%c0_40, %c2] : memref<32x4xf32, #tpu.memory_space<vmem>>, vector<32x1xf32>
    %72 = vector.broadcast %71 : vector<32x1xf32> to vector<32x128xf32>
    %73 = arith.mulf %59, %72 : vector<32x128xf32>
    %c0_41 = arith.constant 0 : index
    %c3 = arith.constant 3 : index
    %74 = vector.load %arg11[%c0_41, %c3] : memref<32x4xf32, #tpu.memory_space<vmem>>, vector<32x1xf32>
    %75 = vector.broadcast %74 : vector<32x1xf32> to vector<32x128xf32>
    %76 = arith.mulf %70, %75 : vector<32x128xf32>
    %77 = arith.addf %73, %76 : vector<32x128xf32>
    %cst_42 = arith.constant dense<0.000000e+00> : vector<128xf32>
    %78 = vector.multi_reduction <add>, %77, %cst_42 [0] : vector<32x128xf32> to vector<128xf32>
    %79 = vector.shape_cast %78 : vector<128xf32> to vector<1x128xf32>
    %cst_43 = arith.constant 3.200000e+01 : f32
    %80 = vector.broadcast %cst_43 : f32 to vector<1x128xf32>
    %81 = arith.divf %79, %80 : vector<1x128xf32>
    %82 = vector.broadcast %81 : vector<1x128xf32> to vector<32x128xf32>
    %83 = arith.subf %77, %82 : vector<32x128xf32>
    %84 = arith.mulf %83, %83 : vector<32x128xf32>
    %cst_44 = arith.constant dense<0.000000e+00> : vector<128xf32>
    %85 = vector.multi_reduction <add>, %84, %cst_44 [0] : vector<32x128xf32> to vector<128xf32>
    %86 = vector.shape_cast %85 : vector<128xf32> to vector<1x128xf32>
    %cst_45 = arith.constant 3.200000e+01 : f32
    %87 = vector.broadcast %cst_45 : f32 to vector<1x128xf32>
    %88 = arith.divf %86, %87 : vector<1x128xf32>
    %89 = vector.broadcast %81 : vector<1x128xf32> to vector<32x128xf32>
    %90 = arith.subf %77, %89 : vector<32x128xf32>
    %cst_46 = arith.constant 9.99999974E-6 : f32
    %91 = vector.broadcast %cst_46 : f32 to vector<1x128xf32>
    %92 = arith.addf %88, %91 : vector<1x128xf32>
    %93 = math.rsqrt %92 : vector<1x128xf32>
    %94 = vector.broadcast %93 : vector<1x128xf32> to vector<32x128xf32>
    %95 = arith.mulf %90, %94 : vector<32x128xf32>
    %c0_47 = arith.constant 0 : index
    %c1_48 = arith.constant 1 : index
    %96 = vector.load %arg12[%c0_47, %c1_48] : memref<32x2xf32, #tpu.memory_space<vmem>>, vector<32x1xf32>
    %97 = vector.broadcast %96 : vector<32x1xf32> to vector<32x128xf32>
    %98 = arith.mulf %95, %97 : vector<32x128xf32>
    %c0_49 = arith.constant 0 : index
    %c1_50 = arith.constant 1 : index
    %99 = vector.load %arg13[%c0_49, %c1_50] : memref<32x2xf32, #tpu.memory_space<vmem>>, vector<32x1xf32>
    %100 = vector.broadcast %99 : vector<32x1xf32> to vector<32x128xf32>
    %101 = arith.addf %98, %100 : vector<32x128xf32>
    %cst_51 = arith.constant 0.000000e+00 : f32
    %102 = vector.broadcast %cst_51 : f32 to vector<32x128xf32>
    %103 = arith.maximumf %101, %102 : vector<32x128xf32>
    %c0_52 = arith.constant 0 : index
    %c0_53 = arith.constant 0 : index
    %104 = vector.load %arg8[%c0_52, %c0_53] : memref<1x64xf32, #tpu.memory_space<vmem>>, vector<1x64xf32>
    %c0_54 = arith.constant 0 : index
    %c0_55 = arith.constant 0 : index
    %105 = vector.load %arg9[%c0_54, %c0_55] : memref<128x64xf32, #tpu.memory_space<vmem>>, vector<128x64xf32>
    %cst_56 = arith.constant dense<0.000000e+00> : vector<32x64xf32>
    %106 = tpu.matmul %103, %105, %cst_56 {dimension_numbers = #tpu.dot_dimension_numbers<[1], [0], [0], [1], [0, 0, 1, 1], [], []>} : vector<32x128xf32>, vector<128x64xf32>, vector<32x64xf32> -> vector<32x64xf32>
    %107 = vector.broadcast %104 : vector<1x64xf32> to vector<32x64xf32>
    %108 = arith.mulf %107, %106 : vector<32x64xf32>
    %c0_57 = arith.constant 0 : index
    %c0_58 = arith.constant 0 : index
    %109 = vector.load %arg10[%c0_57, %c0_58] : memref<64x128xf32, #tpu.memory_space<vmem>>, vector<64x128xf32>
    %cst_59 = arith.constant dense<0.000000e+00> : vector<32x128xf32>
    %110 = tpu.matmul %108, %109, %cst_59 {dimension_numbers = #tpu.dot_dimension_numbers<[1], [0], [0], [1], [0, 0, 1, 1], [], []>} : vector<32x64xf32>, vector<64x128xf32>, vector<32x128xf32> -> vector<32x128xf32>
    %111 = vector.broadcast %13 : f32 to vector<32x128xf32>
    %112 = arith.mulf %103, %111 : vector<32x128xf32>
    %113 = vector.broadcast %14 : f32 to vector<32x128xf32>
    %114 = arith.mulf %113, %110 : vector<32x128xf32>
    %115 = arith.addf %112, %114 : vector<32x128xf32>
    %c0_60 = arith.constant 0 : index
    %c0_61 = arith.constant 0 : index
    %116 = vector.load %arg11[%c0_60, %c0_61] : memref<32x4xf32, #tpu.memory_space<vmem>>, vector<32x1xf32>
    %117 = vector.broadcast %116 : vector<32x1xf32> to vector<32x128xf32>
    %118 = arith.mulf %103, %117 : vector<32x128xf32>
    %c0_62 = arith.constant 0 : index
    %c1_63 = arith.constant 1 : index
    %119 = vector.load %arg11[%c0_62, %c1_63] : memref<32x4xf32, #tpu.memory_space<vmem>>, vector<32x1xf32>
    %120 = vector.broadcast %119 : vector<32x1xf32> to vector<32x128xf32>
    %121 = arith.mulf %115, %120 : vector<32x128xf32>
    %122 = arith.addf %118, %121 : vector<32x128xf32>
    %cst_64 = arith.constant dense<0.000000e+00> : vector<128xf32>
    %123 = vector.multi_reduction <add>, %122, %cst_64 [0] : vector<32x128xf32> to vector<128xf32>
    %124 = vector.shape_cast %123 : vector<128xf32> to vector<1x128xf32>
    %cst_65 = arith.constant 3.200000e+01 : f32
    %125 = vector.broadcast %cst_65 : f32 to vector<1x128xf32>
    %126 = arith.divf %124, %125 : vector<1x128xf32>
    %127 = vector.broadcast %126 : vector<1x128xf32> to vector<32x128xf32>
    %128 = arith.subf %122, %127 : vector<32x128xf32>
    %129 = arith.mulf %128, %128 : vector<32x128xf32>
    %cst_66 = arith.constant dense<0.000000e+00> : vector<128xf32>
    %130 = vector.multi_reduction <add>, %129, %cst_66 [0] : vector<32x128xf32> to vector<128xf32>
    %131 = vector.shape_cast %130 : vector<128xf32> to vector<1x128xf32>
    %cst_67 = arith.constant 3.200000e+01 : f32
    %132 = vector.broadcast %cst_67 : f32 to vector<1x128xf32>
    %133 = arith.divf %131, %132 : vector<1x128xf32>
    %134 = vector.broadcast %126 : vector<1x128xf32> to vector<32x128xf32>
    %135 = arith.subf %122, %134 : vector<32x128xf32>
    %cst_68 = arith.constant 9.99999974E-6 : f32
    %136 = vector.broadcast %cst_68 : f32 to vector<1x128xf32>
    %137 = arith.addf %133, %136 : vector<1x128xf32>
    %138 = math.rsqrt %137 : vector<1x128xf32>
    %139 = vector.broadcast %138 : vector<1x128xf32> to vector<32x128xf32>
    %140 = arith.mulf %135, %139 : vector<32x128xf32>
    %c0_69 = arith.constant 0 : index
    %c0_70 = arith.constant 0 : index
    %141 = vector.load %arg12[%c0_69, %c0_70] : memref<32x2xf32, #tpu.memory_space<vmem>>, vector<32x1xf32>
    %142 = vector.broadcast %141 : vector<32x1xf32> to vector<32x128xf32>
    %143 = arith.mulf %140, %142 : vector<32x128xf32>
    %c0_71 = arith.constant 0 : index
    %c0_72 = arith.constant 0 : index
    %144 = vector.load %arg13[%c0_71, %c0_72] : memref<32x2xf32, #tpu.memory_space<vmem>>, vector<32x1xf32>
    %145 = vector.broadcast %144 : vector<32x1xf32> to vector<32x128xf32>
    %146 = arith.addf %143, %145 : vector<32x128xf32>
    %cst_73 = arith.constant 0.000000e+00 : f32
    %147 = vector.broadcast %cst_73 : f32 to vector<32x128xf32>
    %148 = arith.maximumf %146, %147 : vector<32x128xf32>
    %c0_74 = arith.constant 0 : index
    %c0_75 = arith.constant 0 : index
    %149 = vector.load %arg9[%c0_74, %c0_75] : memref<128x64xf32, #tpu.memory_space<vmem>>, vector<128x64xf32>
    %cst_76 = arith.constant dense<0.000000e+00> : vector<32x64xf32>
    %150 = tpu.matmul %148, %149, %cst_76 {dimension_numbers = #tpu.dot_dimension_numbers<[1], [0], [0], [1], [0, 0, 1, 1], [], []>} : vector<32x128xf32>, vector<128x64xf32>, vector<32x64xf32> -> vector<32x64xf32>
    %151 = vector.broadcast %104 : vector<1x64xf32> to vector<32x64xf32>
    %152 = arith.mulf %151, %150 : vector<32x64xf32>
    %c0_77 = arith.constant 0 : index
    %c0_78 = arith.constant 0 : index
    %153 = vector.load %arg10[%c0_77, %c0_78] : memref<64x128xf32, #tpu.memory_space<vmem>>, vector<64x128xf32>
    %cst_79 = arith.constant dense<0.000000e+00> : vector<32x128xf32>
    %154 = tpu.matmul %152, %153, %cst_79 {dimension_numbers = #tpu.dot_dimension_numbers<[1], [0], [0], [1], [0, 0, 1, 1], [], []>} : vector<32x64xf32>, vector<64x128xf32>, vector<32x128xf32> -> vector<32x128xf32>
    %155 = vector.broadcast %13 : f32 to vector<32x128xf32>
    %156 = arith.mulf %148, %155 : vector<32x128xf32>
    %157 = vector.broadcast %14 : f32 to vector<32x128xf32>
    %158 = arith.mulf %157, %154 : vector<32x128xf32>
    %159 = arith.addf %156, %158 : vector<32x128xf32>
    %c0_80 = arith.constant 0 : index
    %c2_81 = arith.constant 2 : index
    %160 = vector.load %arg11[%c0_80, %c2_81] : memref<32x4xf32, #tpu.memory_space<vmem>>, vector<32x1xf32>
    %161 = vector.broadcast %160 : vector<32x1xf32> to vector<32x128xf32>
    %162 = arith.mulf %148, %161 : vector<32x128xf32>
    %c0_82 = arith.constant 0 : index
    %c3_83 = arith.constant 3 : index
    %163 = vector.load %arg11[%c0_82, %c3_83] : memref<32x4xf32, #tpu.memory_space<vmem>>, vector<32x1xf32>
    %164 = vector.broadcast %163 : vector<32x1xf32> to vector<32x128xf32>
    %165 = arith.mulf %159, %164 : vector<32x128xf32>
    %166 = arith.addf %162, %165 : vector<32x128xf32>
    %cst_84 = arith.constant dense<0.000000e+00> : vector<128xf32>
    %167 = vector.multi_reduction <add>, %166, %cst_84 [0] : vector<32x128xf32> to vector<128xf32>
    %168 = vector.shape_cast %167 : vector<128xf32> to vector<1x128xf32>
    %cst_85 = arith.constant 3.200000e+01 : f32
    %169 = vector.broadcast %cst_85 : f32 to vector<1x128xf32>
    %170 = arith.divf %168, %169 : vector<1x128xf32>
    %171 = vector.broadcast %170 : vector<1x128xf32> to vector<32x128xf32>
    %172 = arith.subf %166, %171 : vector<32x128xf32>
    %173 = arith.mulf %172, %172 : vector<32x128xf32>
    %cst_86 = arith.constant dense<0.000000e+00> : vector<128xf32>
    %174 = vector.multi_reduction <add>, %173, %cst_86 [0] : vector<32x128xf32> to vector<128xf32>
    %175 = vector.shape_cast %174 : vector<128xf32> to vector<1x128xf32>
    %cst_87 = arith.constant 3.200000e+01 : f32
    %176 = vector.broadcast %cst_87 : f32 to vector<1x128xf32>
    %177 = arith.divf %175, %176 : vector<1x128xf32>
    %178 = vector.broadcast %170 : vector<1x128xf32> to vector<32x128xf32>
    %179 = arith.subf %166, %178 : vector<32x128xf32>
    %cst_88 = arith.constant 9.99999974E-6 : f32
    %180 = vector.broadcast %cst_88 : f32 to vector<1x128xf32>
    %181 = arith.addf %177, %180 : vector<1x128xf32>
    %182 = math.rsqrt %181 : vector<1x128xf32>
    %183 = vector.broadcast %182 : vector<1x128xf32> to vector<32x128xf32>
    %184 = arith.mulf %179, %183 : vector<32x128xf32>
    %c0_89 = arith.constant 0 : index
    %c1_90 = arith.constant 1 : index
    %185 = vector.load %arg12[%c0_89, %c1_90] : memref<32x2xf32, #tpu.memory_space<vmem>>, vector<32x1xf32>
    %186 = vector.broadcast %185 : vector<32x1xf32> to vector<32x128xf32>
    %187 = arith.mulf %184, %186 : vector<32x128xf32>
    %c0_91 = arith.constant 0 : index
    %c1_92 = arith.constant 1 : index
    %188 = vector.load %arg13[%c0_91, %c1_92] : memref<32x2xf32, #tpu.memory_space<vmem>>, vector<32x1xf32>
    %189 = vector.broadcast %188 : vector<32x1xf32> to vector<32x128xf32>
    %190 = arith.addf %187, %189 : vector<32x128xf32>
    %cst_93 = arith.constant 0.000000e+00 : f32
    %191 = vector.broadcast %cst_93 : f32 to vector<32x128xf32>
    %192 = arith.maximumf %190, %191 : vector<32x128xf32>
    %c0_94 = arith.constant 0 : index
    %c0_95 = arith.constant 0 : index
    %193 = vector.load %arg14[%c0_94, %c0_95] : memref<32x3xf32, #tpu.memory_space<vmem>>, vector<32x1xf32>
    %194 = vector.broadcast %193 : vector<32x1xf32> to vector<32x128xf32>
    %195 = arith.mulf %12, %194 : vector<32x128xf32>
    %cst_96 = arith.constant dense<0.000000e+00> : vector<128xf32>
    %196 = vector.multi_reduction <add>, %195, %cst_96 [0] : vector<32x128xf32> to vector<128xf32>
    %197 = vector.shape_cast %196 : vector<128xf32> to vector<1x128xf32>
    %198 = arith.negf %197 : vector<1x128xf32>
    %199 = math.exp %198 : vector<1x128xf32>
    %cst_97 = arith.constant 1.000000e+00 : f32
    %200 = vector.broadcast %cst_97 : f32 to vector<1x128xf32>
    %201 = arith.addf %200, %199 : vector<1x128xf32>
    %202 = arith.divf %200, %201 : vector<1x128xf32>
    %c0_98 = arith.constant 0 : index
    %c1_99 = arith.constant 1 : index
    %203 = vector.load %arg14[%c0_98, %c1_99] : memref<32x3xf32, #tpu.memory_space<vmem>>, vector<32x1xf32>
    %204 = vector.broadcast %203 : vector<32x1xf32> to vector<32x128xf32>
    %205 = arith.mulf %103, %204 : vector<32x128xf32>
    %cst_100 = arith.constant dense<0.000000e+00> : vector<128xf32>
    %206 = vector.multi_reduction <add>, %205, %cst_100 [0] : vector<32x128xf32> to vector<128xf32>
    %207 = vector.shape_cast %206 : vector<128xf32> to vector<1x128xf32>
    %208 = arith.negf %207 : vector<1x128xf32>
    %209 = math.exp %208 : vector<1x128xf32>
    %cst_101 = arith.constant 1.000000e+00 : f32
    %210 = vector.broadcast %cst_101 : f32 to vector<1x128xf32>
    %211 = arith.addf %210, %209 : vector<1x128xf32>
    %212 = arith.divf %210, %211 : vector<1x128xf32>
    %c0_102 = arith.constant 0 : index
    %c2_103 = arith.constant 2 : index
    %213 = vector.load %arg14[%c0_102, %c2_103] : memref<32x3xf32, #tpu.memory_space<vmem>>, vector<32x1xf32>
    %214 = vector.broadcast %213 : vector<32x1xf32> to vector<32x128xf32>
    %215 = arith.mulf %192, %214 : vector<32x128xf32>
    %cst_104 = arith.constant dense<0.000000e+00> : vector<128xf32>
    %216 = vector.multi_reduction <add>, %215, %cst_104 [0] : vector<32x128xf32> to vector<128xf32>
    %217 = vector.shape_cast %216 : vector<128xf32> to vector<1x128xf32>
    %218 = arith.negf %217 : vector<1x128xf32>
    %219 = math.exp %218 : vector<1x128xf32>
    %cst_105 = arith.constant 1.000000e+00 : f32
    %220 = vector.broadcast %cst_105 : f32 to vector<1x128xf32>
    %221 = arith.addf %220, %219 : vector<1x128xf32>
    %222 = arith.divf %220, %221 : vector<1x128xf32>
    %c0_106 = arith.constant 0 : index
    %c0_107 = arith.constant 0 : index
    %223 = memref.load %arg18[%c0_106, %c0_107] : memref<3x3xf32, #tpu.memory_space<smem>>
    %224 = vector.broadcast %223 : f32 to vector<1x128xf32>
    %225 = arith.mulf %202, %224 : vector<1x128xf32>
    %c1_108 = arith.constant 1 : index
    %c0_109 = arith.constant 0 : index
    %226 = memref.load %arg18[%c1_108, %c0_109] : memref<3x3xf32, #tpu.memory_space<smem>>
    %227 = vector.broadcast %226 : f32 to vector<1x128xf32>
    %228 = arith.mulf %212, %227 : vector<1x128xf32>
    %229 = arith.addf %225, %228 : vector<1x128xf32>
    %c2_110 = arith.constant 2 : index
    %c0_111 = arith.constant 0 : index
    %230 = memref.load %arg18[%c2_110, %c0_111] : memref<3x3xf32, #tpu.memory_space<smem>>
    %231 = vector.broadcast %230 : f32 to vector<1x128xf32>
    %232 = arith.mulf %222, %231 : vector<1x128xf32>
    %233 = arith.addf %229, %232 : vector<1x128xf32>
    %c0_112 = arith.constant 0 : index
    %c1_113 = arith.constant 1 : index
    %234 = memref.load %arg18[%c0_112, %c1_113] : memref<3x3xf32, #tpu.memory_space<smem>>
    %235 = vector.broadcast %234 : f32 to vector<1x128xf32>
    %236 = arith.mulf %202, %235 : vector<1x128xf32>
    %c1_114 = arith.constant 1 : index
    %c1_115 = arith.constant 1 : index
    %237 = memref.load %arg18[%c1_114, %c1_115] : memref<3x3xf32, #tpu.memory_space<smem>>
    %238 = vector.broadcast %237 : f32 to vector<1x128xf32>
    %239 = arith.mulf %212, %238 : vector<1x128xf32>
    %240 = arith.addf %236, %239 : vector<1x128xf32>
    %c2_116 = arith.constant 2 : index
    %c1_117 = arith.constant 1 : index
    %241 = memref.load %arg18[%c2_116, %c1_117] : memref<3x3xf32, #tpu.memory_space<smem>>
    %242 = vector.broadcast %241 : f32 to vector<1x128xf32>
    %243 = arith.mulf %222, %242 : vector<1x128xf32>
    %244 = arith.addf %240, %243 : vector<1x128xf32>
    %c0_118 = arith.constant 0 : index
    %c2_119 = arith.constant 2 : index
    %245 = memref.load %arg18[%c0_118, %c2_119] : memref<3x3xf32, #tpu.memory_space<smem>>
    %246 = vector.broadcast %245 : f32 to vector<1x128xf32>
    %247 = arith.mulf %202, %246 : vector<1x128xf32>
    %c1_120 = arith.constant 1 : index
    %c2_121 = arith.constant 2 : index
    %248 = memref.load %arg18[%c1_120, %c2_121] : memref<3x3xf32, #tpu.memory_space<smem>>
    %249 = vector.broadcast %248 : f32 to vector<1x128xf32>
    %250 = arith.mulf %212, %249 : vector<1x128xf32>
    %251 = arith.addf %247, %250 : vector<1x128xf32>
    %c2_122 = arith.constant 2 : index
    %c2_123 = arith.constant 2 : index
    %252 = memref.load %arg18[%c2_122, %c2_123] : memref<3x3xf32, #tpu.memory_space<smem>>
    %253 = vector.broadcast %252 : f32 to vector<1x128xf32>
    %254 = arith.mulf %222, %253 : vector<1x128xf32>
    %255 = arith.addf %251, %254 : vector<1x128xf32>
    %256 = arith.maximumf %233, %244 : vector<1x128xf32>
    %257 = arith.maximumf %256, %255 : vector<1x128xf32>
    %258 = arith.subf %233, %257 : vector<1x128xf32>
    %259 = math.exp %258 : vector<1x128xf32>
    %260 = arith.subf %244, %257 : vector<1x128xf32>
    %261 = math.exp %260 : vector<1x128xf32>
    %262 = arith.subf %255, %257 : vector<1x128xf32>
    %263 = math.exp %262 : vector<1x128xf32>
    %264 = arith.addf %259, %261 : vector<1x128xf32>
    %265 = arith.addf %264, %263 : vector<1x128xf32>
    %266 = arith.divf %259, %265 : vector<1x128xf32>
    %267 = vector.broadcast %266 : vector<1x128xf32> to vector<32x128xf32>
    %268 = arith.mulf %267, %12 : vector<32x128xf32>
    %269 = arith.divf %261, %265 : vector<1x128xf32>
    %270 = vector.broadcast %269 : vector<1x128xf32> to vector<32x128xf32>
    %271 = arith.mulf %270, %103 : vector<32x128xf32>
    %272 = arith.addf %268, %271 : vector<32x128xf32>
    %273 = arith.divf %263, %265 : vector<1x128xf32>
    %274 = vector.broadcast %273 : vector<1x128xf32> to vector<32x128xf32>
    %275 = arith.mulf %274, %192 : vector<32x128xf32>
    %276 = arith.addf %272, %275 : vector<32x128xf32>
    %c0_124 = arith.constant 0 : index
    %c0_125 = arith.constant 0 : index
    %277 = vector.load %arg15[%c0_124, %c0_125] : memref<8x32xf32, #tpu.memory_space<vmem>>, vector<8x32xf32>
    %cst_126 = arith.constant dense<0.000000e+00> : vector<8x128xf32>
    %278 = tpu.matmul %277, %276, %cst_126 {dimension_numbers = #tpu.dot_dimension_numbers<[1], [0], [0], [1], [0, 0, 1, 1], [], []>} : vector<8x32xf32>, vector<32x128xf32>, vector<8x128xf32> -> vector<8x128xf32>
    %c0_127 = arith.constant 0 : index
    %c0_128 = arith.constant 0 : index
    %279 = vector.load %arg16[%c0_127, %c0_128] : memref<8x1xf32, #tpu.memory_space<vmem>>, vector<8x1xf32>
    %280 = vector.broadcast %279 : vector<8x1xf32> to vector<8x128xf32>
    %281 = arith.addf %278, %280 : vector<8x128xf32>
    %cst_129 = arith.constant dense<0xFF800000> : vector<128xf32>
    %282 = vector.multi_reduction <maximumf>, %281, %cst_129 [0] : vector<8x128xf32> to vector<128xf32>
    %283 = vector.shape_cast %282 : vector<128xf32> to vector<1x128xf32>
    %284 = vector.broadcast %283 : vector<1x128xf32> to vector<8x128xf32>
    %285 = arith.subf %281, %284 : vector<8x128xf32>
    %286 = math.exp %285 : vector<8x128xf32>
    %cst_130 = arith.constant dense<0.000000e+00> : vector<128xf32>
    %287 = vector.multi_reduction <add>, %286, %cst_130 [0] : vector<8x128xf32> to vector<128xf32>
    %288 = vector.shape_cast %287 : vector<128xf32> to vector<1x128xf32>
    %289 = math.log %288 : vector<1x128xf32>
    %290 = vector.broadcast %289 : vector<1x128xf32> to vector<8x128xf32>
    %291 = arith.subf %285, %290 : vector<8x128xf32>
    %c0_131 = arith.constant 0 : index
    %c0_132 = arith.constant 0 : index
    %292 = vector.load %arg19[%c0_131, %c0_132] : memref<8x128xf32, #tpu.memory_space<vmem>>, vector<8x128xf32>
    tpu.vector_store %arg19[%c0_131, %c0_132], %291 {strides = array<i32>} : memref<8x128xf32, #tpu.memory_space<vmem>>, vector<8x128xf32>,
    return
  }
}

</mosaic_0001>

<bundles_post_ra>
// kernel: mfnn_forward.1
= control target key start
LH: loop header
LB: loop body
LE: loop exit
PB: predicated region body
PF: predicated region fallthrough
CT: control target
= control target key end

     0   :  { %s3535_s0 = inlined_call_operand.vmem [shape: f32[32,128], index: 0, kind: input, shape index: {}]   ;;  %s3536_s1 = inlined_call_operand.vmem [shape: f32[32,32], index: 1, kind: input, shape index: {}]   ;;  %s3537_s2 = inlined_call_operand.vmem [shape: f32[32,1], index: 2, kind: input, shape index: {}]   ;;  %s3538_s3 = inlined_call_operand.vmem [shape: f32[32,32], index: 3, kind: input, shape index: {}]   ;;  %s3539_s4 = inlined_call_operand.vmem [shape: f32[32,1], index: 4, kind: input, shape index: {}]   ;;  %s3540_s5 = inlined_call_operand.vmem [shape: f32[1,64], index: 5, kind: input, shape index: {}]   ;;  %s3541_s6 = inlined_call_operand.vmem [shape: f32[128,64], index: 6, kind: input, shape index: {}]   ;;  %s3542_s7 = inlined_call_operand.vmem [shape: f32[64,128], index: 7, kind: input, shape index: {}]   ;;  %s3543_s8 = inlined_call_operand.vmem [shape: f32[1,64], index: 8, kind: input, shape index: {}]   ;;  %s3544_s9 = inlined_call_operand.vmem [shape: f32[128,64], index: 9, kind: input, shape index: {}]   ;;  %s3545_s10 = inlined_call_operand.vmem [shape: f32[64,128], index: 10, kind: input, shape index: {}]   ;;  %s3546_s11 = inlined_call_operand.vmem [shape: f32[32,4], index: 11, kind: input, shape index: {}]   ;;  %s3547_s12 = inlined_call_operand.vmem [shape: f32[32,2], index: 12, kind: input, shape index: {}]   ;;  %s3548_s13 = inlined_call_operand.vmem [shape: f32[32,2], index: 13, kind: input, shape index: {}]   ;;  %s3549_s14 = inlined_call_operand.vmem [shape: f32[32,3], index: 14, kind: input, shape index: {}]   ;;  %s3550_s15 = inlined_call_operand.vmem [shape: f32[8,32], index: 15, kind: input, shape index: {}]   ;;  %s3551_s16 = inlined_call_operand.vmem [shape: f32[8,1], index: 16, kind: input, shape index: {}]   ;;  %s3552_s17 = inlined_call_operand.vmem [shape: f32[2], index: 17, kind: input, shape index: {}]   ;;  %s3553_s18 = inlined_call_operand.vmem [shape: f32[3,3], index: 18, kind: input, shape index: {}]   ;;  %s3554_s19 = inlined_call_operand.hbm [shape: f32[8,128], index: 19, kind: output, shape index: {}]  }
   0x1   :  { %3567 = sst [smem:[#allocation15_spill]] %s3535_s0 }
   0x2   :  { %3568 = sst [smem:[#allocation16_spill]] %s3536_s1 }
   0x3   :  { %3569 = sst [smem:[#allocation17_spill]] %s3537_s2 }
   0x4   :  { %3570 = sst [smem:[#allocation18_spill]] %s3538_s3 }
   0x5   :  { %24 = vsyncpa [#allocation4], 0 }
   0x6   :  { %25 = vsyncpa [#allocation6], 0 }
   0x7   :  { %26 = vsyncpa [#allocation3], 0  ;;  %s67_s20 = sshll.u32 %s3552_s17, 4  ;;  %s77_s22 = sshll.u32 %s3553_s18, 4  ;;  %s68_s20 = int_to_ptr.vmem [resolvable:$true] %s67_s20  ;;  %s78_s22 = int_to_ptr.vmem [resolvable:$true] %s77_s22 }
   0x8   :  { %s2637_s2 = scalar_lea.vmem %s68_s20, 16  ;;  %p2642_p1 = scmp.lt.s32.totalorder %s68_s20, %s68_s20 }
   0x9   :  { %p2638_p0 = scmp.ne.s32.totalorder %s68_s20, %s2637_s2  ;;  %p2643_p2 = scmp.lt.s32.totalorder %s2637_s2, %s2637_s2 }
   0xb   :  { %p2644_p3 = por %p2643_p2, %p2642_p1 }
   0xd   :  { %p2645_p4 = pnand %p2644_p3, %p2638_p0 }
   0xf   :  { %2648 = shalt.err (!%p2645_p4)
}
  0x10   :  { %s2689_s23 = smov [#allocation2]   ;;  %s2649_s24 = scalar_lea.vmem %s78_s22, 64 }
  0x11   :  { %70 = dma.vmem_to_smem %s68_s20, 16, %s2689_s23, [#allocation4]  }
  0x12   :  { %p2650_p5 = scmp.ne.s32.totalorder %s78_s22, %s2649_s24  ;;  %p2654_p6 = scmp.lt.s32.totalorder %s78_s22, %s78_s22 }
  0x13   :  { %p2655_p7 = scmp.lt.s32.totalorder %s2649_s24, %s2649_s24 }
  0x15   :  { %p2656_p8 = por %p2655_p7, %p2654_p6 }
  0x17   :  { %p2657_p9 = pnand %p2656_p8, %p2650_p5 }
  0x19   :  { %2660 = shalt.err (!%p2657_p9)
}
  0x1a   :  { %s2690_s17 = smov [#allocation5]  }
  0x1b   :  { %80 = dma.vmem_to_smem %s78_s22, 64, %s2690_s17, [#allocation6]  }
  0x1c   :  { %2683 = dma.done.wait [#allocation4], 16  }
  0x1d   :  { %2684 = vsyncadd [#allocation4], 4294967280 }
  0x1e   :  { %2685 = dma.done.wait [#allocation6], 64  }
  0x1f   :  { %2686 = vsyncadd [#allocation6], 4294967232 }
  0x20   :  { %87 = sfence }
  0x21   :  { %s3571_s3 = sld [smem:[#allocation15_spill]]  ;;  %vm120_vm0 = vcmask 261120   ;;  %s3572_s1 = sld [smem:[#allocation16_spill]]  ;;  %v2691_v6 = vmov 0   ;;  %v226_v13 = vld [vmem:[%s3539_s4] sm:$0xff]  ;;  %v227_v15 = vld [vmem:[%s3539_s4 + $0x8] sm:$0xff] }
  0x22   :  { %2580 = vset.pattern.permute.xlu0 %v2691_v6  ;;  %2581 = vset.pattern.permute.xlu1 %v2691_v6  ;;  %s3573_s23 = sld [smem:[#allocation17_spill]]  ;;  %v228_v17 = vld [vmem:[%s3539_s4 + $0x10] sm:$0xff]  ;;  %v229_v18 = vld [vmem:[%s3539_s4 + $0x18] sm:$0xff]  ;;  %v581_v19 = vld [vmem:[%s3546_s11] sm:$0xff]  ;;  %v2692_v21 = vmov 1   ;;  %s3574_s21 = sld [smem:[#allocation18_spill]] }
  0x23   :  { %v582_v20 = vld [vmem:[%s3546_s11 + $0x8] sm:$0xff]  ;;  %v583_v22 = vld [vmem:[%s3546_s11 + $0x10] sm:$0xff]  ;;  %v584_v23 = vld [vmem:[%s3546_s11 + $0x18] sm:$0xff]  ;;  %v2693_v33 = vmov 3   ;;  %v2694_v34 = vmov 2   ;;  %vm469_vm1 = vcmask 523264  }
  0x24   :  { %v668_v25 = vld [vmem:[%s3547_s12] sm:$0xff]  ;;  %v697_v27 = vld [vmem:[%s3548_s13 + $0x8] sm:$0xff]  ;;  %v670_v29 = vld [vmem:[%s3547_s12 + $0x10] sm:$0xff]  ;;  %vm2696_vm2 = vmmov 0   ;;  %s1925_s30 = sld [smem:[#allocation5 + $0x82]]  ;;  %s1920_s20 = sld [smem:[#allocation5 + $0x100]] }
  0x25   :  { %v696_v26 = vld [vmem:[%s3548_s13] sm:$0xff]  ;;  %v669_v28 = vld [vmem:[%s3547_s12 + $0x8] sm:$0xff]  ;;  %v671_v30 = vld [vmem:[%s3547_s12 + $0x18] sm:$0xff]  ;;  %s1704_s12 = sld [smem:[#allocation5]]  ;;  %s1924_s22 = sld [smem:[#allocation5 + $0x2]] }
  0x26   :  { %v698_v31 = vld [vmem:[%s3548_s13 + $0x10] sm:$0xff]  ;;  %v699_v32 = vld [vmem:[%s3548_s13 + $0x18] sm:$0xff]  ;;  %v1591_v35 = vld [vmem:[%s3549_s14] sm:$0xff]  ;;  %s1921_s13 = sld [smem:[#allocation5 + $0x1]] }
  0x27   :  { %v92_v0 = vld [vmem:[%s3571_s3] sm:$0xff]  ;;  %v93_v1 = vld [vmem:[%s3571_s3 + $0x8] sm:$0xff]  ;;  %v94_v2 = vld [vmem:[%s3571_s3 + $0x10] sm:$0xff]  ;;  %s1923_s2 = sld [smem:[#allocation5 + $0x101]] }
  0x28   :  { %v2356_v3 = vpack.c.bf16 %v93_v1, %v92_v0  ;;  %v95_v4 = vld [vmem:[%s3571_s3 + $0x18] sm:$0xff]  ;;  %v88_v5 = vld [vmem:[%s3572_s1] sm:$0xff]  ;;  %v98_v9 = vld [vmem:[%s3573_s23 + $0x10] sm:$0xff] }
  0x29   :  { %v2360_v7 = vpack.c.bf16 %v95_v4, %v94_v2  ;;  %2085 = vmatprep.mubr.msk.f32.mxu0 %vm120_vm0, %v88_v5  ;;  %v96_v8 = vld [vmem:[%s3573_s23] sm:$0xff]  ;;  %112 = vperm.xlu1 %2581, %v98_v9   ;;  %v97_v10 = vld [vmem:[%s3573_s23 + $0x8] sm:$0xff]  ;;  %v99_v11 = vld [vmem:[%s3573_s23 + $0x18] sm:$0xff]  ;;  %s1926_s23 = sld [smem:[#allocation5 + $0x102]] }
  0x2a   :  { %2357 = vmatprep.subr.bf16.mxu0 %v2356_v3  ;;  %102 = vperm.xlu0 %2580, %v96_v8   ;;  %v89_v12 = vld [vmem:[%s3572_s1 + $0x8] sm:$0xff]  ;;  %v90_v14 = vld [vmem:[%s3572_s1 + $0x10] sm:$0xff]  ;;  %v91_v16 = vld [vmem:[%s3572_s1 + $0x18] sm:$0xff] }
  0x2b   :  { %2359 = vmatpush3.bf16.msra.mxu0 %v2356_v3  ;;  %v222_v24 = vld [vmem:[%s3574_s21] sm:$0xff]  ;;  %v351_v37 = vld [vmem:[%s3541_s6 + $0x8] sm:$0xff]  ;;  %v352_v39 = vld [vmem:[%s3541_s6 + $0x10] sm:$0xff] }
  0x2c   :  { %2361 = vmatprep.subr.bf16.mxu0 %v2360_v7  ;;  %2099 = vmatprep.mubr.msk.f32.mxu1 %vm120_vm0, %v222_v24  ;;  %v350_v36 = vld [vmem:[%s3541_s6] sm:$0xff]  ;;  %v353_v40 = vld [vmem:[%s3541_s6 + $0x18] sm:$0xff]  ;;  %v1592_v42 = vld [vmem:[%s3549_s14 + $0x8] sm:$0xff] }
  0x2d   :  { %117 = vperm.xlu1 %2581, %v99_v11   ;;  %v2918_v38 = vpack.c.bf16 %v351_v37, %v350_v36  ;;  %v2929_v41 = vpack.c.bf16 %v353_v40, %v352_v39  ;;  %v354_v43 = vld [vmem:[%s3541_s6 + $0x20] sm:$0xff]  ;;  %v355_v44 = vld [vmem:[%s3541_s6 + $0x28] sm:$0xff]  ;;  %v1594_v46 = vld [vmem:[%s3549_s14 + $0x18] sm:$0xff] }
  0x2e   :  { %107 = vperm.xlu0 %2580, %v97_v10   ;;  %v2943_v45 = vpack.c.bf16 %v355_v44, %v354_v43  ;;  %v356_v47 = vld [vmem:[%s3541_s6 + $0x30] sm:$0xff]  ;;  %v357_v48 = vld [vmem:[%s3541_s6 + $0x38] sm:$0xff]  ;;  %v358_v50 = vld [vmem:[%s3541_s6 + $0x40] sm:$0xff] }
  0x2f   :  { %2363 = vmatpush3.bf16.msra.mxu0 %v2360_v7  ;;  %v2956_v49 = vpack.c.bf16 %v357_v48, %v356_v47  ;;  %v359_v51 = vld [vmem:[%s3541_s6 + $0x48] sm:$0xff]  ;;  %v360_v53 = vld [vmem:[%s3541_s6 + $0x50] sm:$0xff]  ;;  %v361_v54 = vld [vmem:[%s3541_s6 + $0x58] sm:$0xff] }
  0x30   :  { %2373 = vmatprep.subr.bf16.mxu0 %v2918_v38  ;;  %v2968_v52 = vpack.c.bf16 %v359_v51, %v358_v50  ;;  %v2979_v55 = vpack.c.bf16 %v361_v54, %v360_v53  ;;  %v1593_v56 = vld [vmem:[%s3549_s14 + $0x10] sm:$0xff]  ;;  %v362_v57 = vld [vmem:[%s3541_s6 + $0x60] sm:$0xff]  ;;  %v363_v58 = vld [vmem:[%s3541_s6 + $0x68] sm:$0xff] }
  0x31   :  { %237 = vperm.xlu1 %2581, %v227_v15   ;;  %v2993_v59 = vpack.c.bf16 %v363_v58, %v362_v57  ;;  %v224_v15 = vld [vmem:[%s3574_s21 + $0x10] sm:$0xff]  ;;  %v464_v24 = vld [vmem:[%s3542_s7 + $0x18] sm:$0xff]  ;;  %v3063_v47 = vld [vmem:[%s3540_s5] ss:$0 sm:$0xff]  ;;  %s347_s5 = sld [smem:[#allocation2]] }
  0x32   :  { %2086 = vmatmul.mubr.msk.f32.vlgmr.msra.gmra.mrb[0].mxu0 %vm120_vm0, %v89_v12  ;;  %232 = vperm.xlu0 %2580, %v226_v13   ;;  %v467_v43 = vld [vmem:[%s3542_s7 + $0x30] sm:$0xff]  ;;  %v468_v44 = vld [vmem:[%s3542_s7 + $0x38] sm:$0xff] }
  0x33   :  { %2088 = vmatprep.mubr.msk.f32.mxu0 %vm120_vm0, %v90_v14  ;;  %2375 = vmatpush3.bf16.msra.mxu0 %v2918_v38  ;;  %v223_v14 = vld [vmem:[%s3574_s21 + $0x8] sm:$0xff] }
  0x34   :  { %2377 = vmatprep.subr.bf16.mxu0 %v2929_v41 }
  0x35   :  { %247 = vperm.xlu1 %2581, %v229_v18   ;;  %v365_v18 = vld [vmem:[%s3541_s6 + $0x78] sm:$0xff] }
  0x36   :  { %2089 = vmatmul.mubr.msk.f32.gmra.mrb[2].mxu0 %vm120_vm0, %v91_v16  ;;  %242 = vperm.xlu0 %2580, %v228_v17   ;;  %v225_v16 = vld [vmem:[%s3574_s21 + $0x18] sm:$0xff]  ;;  %v364_v17 = vld [vmem:[%s3541_s6 + $0x70] sm:$0xff] }
  0x37   :  { %2379 = vmatpush3.bf16.msra.mxu0 %v2929_v41 }
  0x38   :  { %2381 = vmatprep.subr.bf16.mxu0 %v2943_v45 }
  0x39   :  { %592 = vperm.xlu1 %2581, %v582_v20  }
  0x3a   :  { %587 = vperm.xlu0 %2580, %v581_v19  }
  0x3b   :  { %2383 = vmatpush3.bf16.msra.mxu0 %v2943_v45 }
  0x3c   :  { %2385 = vmatprep.subr.bf16.mxu0 %v2956_v49 }
  0x3d   :  { %2583 = vset.pattern.permute.xlu1 %v2692_v21 }
  0x3e   :  { %2582 = vset.pattern.permute.xlu0 %v2692_v21  ;;  %614 = vperm.xlu1 %2583, %v582_v20  }
  0x3f   :  { %610 = vperm.xlu0 %2582, %v581_v19   ;;  %2387 = vmatpush3.bf16.msra.mxu0 %v2956_v49 }
  0x40   :  { %2389 = vmatprep.subr.bf16.mxu0 %v2968_v52 }
  0x42   :  { %2584 = vset.pattern.permute.xlu1 %v2691_v6 }
  0x43   :  { %597 = vperm.xlu1 %2584, %v583_v22   ;;  %618 = vperm.xlu0 %2582, %v583_v22  }
  0x44   :  { %2391 = vmatpush3.bf16.msra.mxu0 %v2968_v52 }
  0x45   :  { %2393 = vmatprep.subr.bf16.mxu0 %v2979_v55 }
  0x47   :  { %602 = vperm.xlu1 %2584, %v584_v23   ;;  %622 = vperm.xlu0 %2582, %v584_v23  }
  0x48   :  { %2395 = vmatpush3.bf16.msra.mxu0 %v2979_v55 }
  0x49   :  { %2397 = vmatprep.subr.bf16.mxu0 %v2993_v59 }
  0x4b   :  { %674 = vperm.xlu1 %2584, %v668_v25   ;;  %2585 = vset.pattern.permute.xlu0 %v2691_v6 }
  0x4c   :  { %679 = vperm.xlu0 %2585, %v669_v28   ;;  %2399 = vmatpush3.bf16.msra.mxu0 %v2993_v59 }
  0x4f   :  { %702 = vperm.xlu1 %2584, %v696_v26  }
  0x50   :  { %684 = vperm.xlu0 %2585, %v670_v29  }
  0x53   :  { %707 = vperm.xlu1 %2584, %v697_v27  }
  0x54   :  { %712 = vperm.xlu0 %2585, %v698_v31  }
  0x57   :  { %689 = vperm.xlu1 %2584, %v671_v30  }
  0x58   :  { %2588 = vset.pattern.permute.xlu0 %v2693_v33 }
  0x59   :  { %951 = vperm.xlu0 %2588, %v582_v20  }
  0x5b   :  { %717 = vperm.xlu1 %2584, %v699_v32  }
  0x5d   :  { %2589 = vset.pattern.permute.xlu0 %v2694_v34 }
  0x5e   :  { %927 = vperm.xlu0 %2589, %v581_v19  }
  0x5f   :  { %2586 = vset.pattern.permute.xlu1 %v2694_v34 }
  0x60   :  { %931 = vperm.xlu1 %2586, %v582_v20   ;;  %v461_v20 = vld [vmem:[%s3542_s7] sm:$0xff] }
  0x62   :  { %939 = vperm.xlu0 %2589, %v584_v23  }
  0x64   :  { %2587 = vset.pattern.permute.xlu1 %v2693_v33 }
  0x65   :  { %947 = vperm.xlu1 %2587, %v581_v19   ;;  %v3019_v19 = vpack.c.bf16 %v365_v18, %v364_v17 }
  0x66   :  { %2593 = vset.pattern.permute.xlu0 %v2692_v21 }
  0x67   :  { %1009 = vperm.xlu0 %2593, %v669_v28   ;;  %2401 = vmatprep.subr.bf16.mxu0 %v3019_v19 }
  0x68   :  { %2403 = vmatpush3.bf16.msra.mxu0 %v3019_v19 }
  0x69   :  { %2590 = vset.pattern.permute.xlu1 %v2694_v34 }
  0x6a   :  { %935 = vperm.xlu1 %2590, %v583_v22  }
  0x6b   :  { %1013 = vperm.xlu0 %2593, %v670_v29  }
  0x6e   :  { %2591 = vset.pattern.permute.xlu1 %v2693_v33 }
  0x6f   :  { %955 = vperm.xlu1 %2591, %v583_v22   ;;  %1033 = vperm.xlu0 %2593, %v698_v31   ;;  %v463_v22 = vld [vmem:[%s3542_s7 + $0x10] sm:$0xff] }
  0x73   :  { %959 = vperm.xlu1 %2591, %v584_v23   ;;  %2594 = vset.pattern.permute.xlu0 %v2691_v6 }
  0x74   :  { %1597 = vperm.xlu0 %2594, %v1591_v35  }
  0x77   :  { %2592 = vset.pattern.permute.xlu1 %v2692_v21 }
  0x78   :  { %1005 = vperm.xlu1 %2592, %v668_v25   ;;  %2599 = vset.pattern.permute.xlu0 %v2694_v34  ;;  %v2408_v25 = vpack.c.bf16 %v464_v24, %v463_v22 }
  0x79   :  { %1670 = vperm.xlu0 %2599, %v1591_v35  }
  0x7c   :  { %1025 = vperm.xlu1 %2592, %v696_v26   ;;  %v465_v26 = vld [vmem:[%s3542_s7 + $0x20] sm:$0xff] }
  0x7d   :  { %2600 = vset.pattern.permute.xlu0 %v2692_v21 }
  0x7e   :  { %1639 = vperm.xlu0 %2600, %v1592_v42  }
  0x80   :  { %1029 = vperm.xlu1 %2592, %v697_v27   ;;  %v466_v27 = vld [vmem:[%s3542_s7 + $0x28] sm:$0xff] }
  0x81   :  { %v2412_v28 = vpack.c.bf16 %v466_v27, %v465_v26 }
  0x82   :  { %1647 = vperm.xlu0 %2600, %v1594_v46  }
  0x84   :  { %1017 = vperm.xlu1 %2592, %v671_v30  }
  0x86   :  { %2604 = vset.pattern.permute.xlu0 %v2691_v6 }
  0x88   :  { %1037 = vperm.xlu1 %2592, %v699_v32  }
  0x8c   :  { %2595 = vset.pattern.permute.xlu1 %v2691_v6 }
  0x8d   :  { %1602 = vperm.xlu1 %2595, %v1592_v42  }
  0x91   :  { %2596 = vset.pattern.permute.xlu1 %v2692_v21 }
  0x92   :  { %1635 = vperm.xlu1 %2596, %v1591_v35  }
  0x96   :  { %2597 = vset.pattern.permute.xlu1 %v2691_v6 }
  0x97   :  { %1607 = vperm.xlu1 %2597, %v1593_v56  }
  0x9b   :  { %2598 = vset.pattern.permute.xlu1 %v2692_v21  ;;  %v462_v21 = vld [vmem:[%s3542_s7 + $0x8] sm:$0xff]  ;;  %s1897_s7 = sld [smem:[#allocation2 + $0x1]] }
  0x9c   :  { %1643 = vperm.xlu1 %2598, %v1593_v56   ;;  %v2404_v23 = vpack.c.bf16 %v462_v21, %v461_v20 }
  0x9e   :  { %2453 = vmatprep.subr.bf16.mxu0 %v2404_v23 }
  0xa0   :  { %2601 = vset.pattern.permute.xlu1 %v2694_v34 }
  0xa1   :  { %1674 = vperm.xlu1 %2601, %v1592_v42  }
  0xa5   :  { %2602 = vset.pattern.permute.xlu1 %v2691_v6 }
  0xa6   :  { %1612 = vperm.xlu1 %2602, %v1594_v46  }
  0xa8   :  { %v113_v61 = vpop.permute.xlu1 %112 }
  0xa9   :  { %v103_v60 = vpop.permute.xlu0 %102 }
  0xaa   :  { %2603 = vset.pattern.permute.xlu1 %v2694_v34 }
  0xab   :  { %1678 = vperm.xlu1 %2603, %v1593_v56  }
  0xac   :  { %v118_v4 = vpop.permute.xlu1 %117 }
  0xad   :  { %v108_v62 = vpop.permute.xlu0 %107 }
  0xaf   :  { %1682 = vperm.xlu1 %2603, %v1594_v46   ;;  %v2416_v46 = vpack.c.bf16 %v468_v44, %v467_v43 }
  0xb0   :  { %v238_v30 = vpop.permute.xlu1 %237 }
  0xb1   :  { %v233_v29 = vpop.permute.xlu0 %232 }
  0xb4   :  { %v248_v39 = vpop.permute.xlu1 %247 }
  0xb5   :  { %v243_v36 = vpop.permute.xlu0 %242 }
 0x105   :  { %v2087_v63 = vpop.f32.mrb[0].mxu0 }
 0x106   :  { %v205_v0 = vadd.f32 %v2087_v63, %v108_v62  ;;  %v199_v1 = vpop.f32.mrb[1].mxu0 }
 0x107   :  { %v200_v2 = vadd.f32 %v199_v1, %v103_v60 }
 0x108   :  { %v219_v3 = vmax.f32 %v205_v0, 0.0 }
 0x109   :  { %v218_v5 = vmax.f32 %v200_v2, 0.0  ;;  %v2090_v7 = vpop.f32.mrb[2].mxu0 }
 0x10a   :  { %v215_v8 = vadd.f32 %v2090_v7, %v118_v4  ;;  %v209_v9 = vpop.f32.mrb[3].mxu0 }
 0x10b   :  { %v210_v10 = vadd.f32 %v209_v9, %v113_v61  ;;  %v2364_v6 = vpack.c.bf16 %v219_v3, %v218_v5 }
 0x10c   :  { %v221_v11 = vmax.f32 %v215_v8, 0.0 }
 0x10d   :  { %v220_v12 = vmax.f32 %v210_v10, 0.0  ;;  %2365 = vmatprep.subr.bf16.mxu1 %v2364_v6 }
 0x10e   :  { %2367 = vmatpush3.bf16.msra.mxu1 %v2364_v6 }
 0x10f   :  { %v2368_v13 = vpack.c.bf16 %v221_v11, %v220_v12 }
 0x111   :  { %2369 = vmatprep.subr.bf16.mxu1 %v2368_v13 }
 0x112   :  { %2371 = vmatpush3.bf16.msra.mxu1 %v2368_v13 }
 0x113   :  { %2405 = vmatprep.subr.bf16.mxu1 %v2404_v23 }
 0x115   :  { %2100 = vmatmul.mubr.msk.f32.vlgmr.msra.gmra.mrb[0].mxu1 %vm120_vm0, %v223_v14 }
 0x116   :  { %2102 = vmatprep.mubr.msk.f32.mxu1 %vm120_vm0, %v224_v15  ;;  %2407 = vmatpush3.bf16.msra.mxu1 %v2404_v23 }
 0x117   :  { %2409 = vmatprep.subr.bf16.mxu1 %v2408_v25 }
 0x119   :  { %2103 = vmatmul.mubr.msk.f32.gmra.mrb[2].mxu1 %vm120_vm0, %v225_v16 }
 0x11a   :  { %2411 = vmatpush3.bf16.msra.mxu1 %v2408_v25 }
 0x11b   :  { %2413 = vmatprep.subr.bf16.mxu1 %v2412_v28 }
 0x11e   :  { %2415 = vmatpush3.bf16.msra.mxu1 %v2412_v28 }
 0x11f   :  { %2417 = vmatprep.subr.bf16.mxu1 %v2416_v46 }
 0x122   :  { %2419 = vmatpush3.bf16.msra.mxu1 %v2416_v46 }
 0x123   :  { %2421 = vmatprep.subr.bf16.mxu1 %v2918_v38 }
 0x1e8   :  { %v2101_v31 = vpop.f32.mrb[0].mxu1 }
 0x1e9   :  { %v328_v32 = vpop.f32.mrb[1].mxu1  ;;  %v3043_v34 = vadd.f32 %v2101_v31, %v238_v30 }
 0x1ea   :  { %v3041_v33 = vadd.f32 %v328_v32, %v233_v29 }
 0x1eb   :  { %3576 = vst [vmem:[#allocation12_spill] sm:$0xff] %v3043_v34 }
 0x1ec   :  { %3575 = vst [vmem:[#allocation11_spill] sm:$0xff] %v3041_v33  ;;  %v2104_v35 = vpop.f32.mrb[2].mxu1  ;;  %2137 = vmatprep.mubr.f32.mxu0 %v3041_v33 }
 0x1ed   :  { %v338_v37 = vpop.f32.mrb[3].mxu1  ;;  %2138 = vmatmul.mubr.f32.vlgmr.msra.gmra.mrb[4].mxu0 %v3043_v34  ;;  %v3049_v42 = vadd.f32 %v2104_v35, %v248_v39 }
 0x1ee   :  { %v3047_v40 = vadd.f32 %v338_v37, %v243_v36  ;;  %2455 = vmatpush3.bf16.msra.mxu0 %v2404_v23 }
 0x1ef   :  { %3578 = vst [vmem:[#allocation14_spill] sm:$0xff] %v3049_v42  ;;  %2457 = vmatprep.subr.bf16.mxu0 %v2408_v25 }
 0x1f0   :  { %3577 = vst [vmem:[#allocation13_spill] sm:$0xff] %v3047_v40  ;;  %2140 = vmatprep.mubr.f32.mxu0 %v3047_v40 }
 0x1f1   :  { %2141 = vmatmul.mubr.f32.gmra.mrb[6].mxu0 %v3049_v42 }
 0x1f2   :  { %2459 = vmatpush3.bf16.msra.mxu0 %v2408_v25 }
 0x1f3   :  { %2461 = vmatprep.subr.bf16.mxu0 %v2412_v28 }
 0x1f6   :  { %2463 = vmatpush3.bf16.msra.mxu0 %v2412_v28 }
 0x1f7   :  { %2465 = vmatprep.subr.bf16.mxu0 %v2416_v46 }
 0x1fa   :  { %2467 = vmatpush3.bf16.msra.mxu0 %v2416_v46 }
 0x2c0   :  { %v2139_v48 = vpop.f32.mrb[4].mxu0 }
 0x2c1   :  { %v432_v50 = vpop.f32.mrb[5].mxu0  ;;  %v458_v53 = vmul.f32 %v2139_v48, %v3063_v47 }
 0x2c2   :  { %v457_v51 = vmul.f32 %v3063_v47, %v432_v50 }
 0x2c4   :  { %v2142_v54 = vpop.f32.mrb[6].mxu0  ;;  %2159 = vmatprep.mubr.msk.f32.mxu1 %vm469_vm1, %v457_v51 }
 0x2c5   :  { %v442_v56 = vpop.f32.mrb[7].mxu0  ;;  %2160 = vmatmul.mubr.msk.f32.vlgmr.msra.gmra.mrb[4].mxu1 %vm469_vm1, %v458_v53  ;;  %v460_v58 = vmul.f32 %v2142_v54, %v3063_v47 }
 0x2c6   :  { %v459_v57 = vmul.f32 %v3063_v47, %v442_v56  ;;  %2423 = vmatpush3.bf16.msra.mxu1 %v2918_v38  ;;  %v3088_v38 = vpop.permute.xlu0 %587 }
 0x2c7   :  { %2425 = vmatprep.subr.bf16.mxu1 %v2929_v41  ;;  %v605_v11 = vmul.f32 %v3088_v38, %v3041_v33 }
 0x2c8   :  { %2162 = vmatprep.mubr.msk.f32.mxu1 %vm469_vm1, %v459_v57 }
 0x2c9   :  { %2163 = vmatmul.mubr.msk.f32.gmra.mrb[6].mxu1 %vm469_vm1, %v460_v58 }
 0x2ca   :  { %2427 = vmatpush3.bf16.msra.mxu1 %v2929_v41  ;;  %v3090_v41 = vpop.permute.xlu1 %592 }
 0x2cb   :  { %2429 = vmatprep.subr.bf16.mxu1 %v2943_v45  ;;  %v606_v7 = vmul.f32 %v3090_v41, %v3043_v34 }
 0x2ce   :  { %2431 = vmatpush3.bf16.msra.mxu1 %v2943_v45  ;;  %v3092_v45 = vpop.permute.xlu0 %610 }
 0x2cf   :  { %2433 = vmatprep.subr.bf16.mxu1 %v2956_v49 }
 0x2d2   :  { %2435 = vmatpush3.bf16.msra.mxu1 %v2956_v49  ;;  %v3094_v49 = vstv %s347_s5  ;;  %v3106_v1 = vpop.permute.xlu0 %618 }
 0x2d3   :  { %2437 = vmatprep.subr.bf16.mxu1 %v2968_v52  ;;  %v568_v63 = vmul.f32 %v3094_v49, %v3041_v33  ;;  %v571_v9 = vmul.f32 %v3094_v49, %v3049_v42  ;;  %v570_v13 = vmul.f32 %v3094_v49, %v3047_v40 }
 0x2d6   :  { %2439 = vmatpush3.bf16.msra.mxu1 %v2968_v52  ;;  %v3096_v52 = vstv %s1897_s7  ;;  %s1922_s7 = sld [smem:[#allocation5 + $0x81]] }
 0x2d7   :  { %2441 = vmatprep.subr.bf16.mxu1 %v2979_v55 }
 0x2da   :  { %2443 = vmatpush3.bf16.msra.mxu1 %v2979_v55  ;;  %v3098_v55 = vpop.permute.xlu1 %614 }
 0x2db   :  { %2445 = vmatprep.subr.bf16.mxu1 %v2993_v59 }
 0x2de   :  { %2447 = vmatpush3.bf16.msra.mxu1 %v2993_v59  ;;  %v569_v59 = vmul.f32 %v3094_v49, %v3043_v34  ;;  %v3108_v5 = vpop.permute.xlu1 %597 }
 0x2df   :  { %2449 = vmatprep.subr.bf16.mxu1 %v3019_v19  ;;  %v607_v22 = vmul.f32 %v3108_v5, %v3047_v40 }
 0x2e2   :  { %2451 = vmatpush3.bf16.msra.mxu1 %v3019_v19  ;;  %v3122_v19 = vpop.permute.xlu0 %622  ;;  %v3128_v24 = vpop.permute.xlu1 %602 }
 0x2e3   :  { %v608_v25 = vmul.f32 %v3128_v24, %v3049_v42 }
 0x398   :  { %v2161_v60 = vpop.f32.mrb[4].mxu1 }
 0x399   :  { %v574_v61 = vmul.f32 %v2161_v60, %v3096_v52  ;;  %v548_v62 = vpop.f32.mrb[5].mxu1 }
 0x39a   :  { %v573_v0 = vmul.f32 %v3096_v52, %v548_v62 }
 0x39b   :  { %v578_v2 = vadd.f32 %v574_v61, %v569_v59 }
 0x39c   :  { %v577_v3 = vadd.f32 %v573_v0, %v568_v63  ;;  %v2164_v4 = vpop.f32.mrb[6].mxu1  ;;  %v3132_v0 = vpop.permute.xlu1 %674 }
 0x39d   :  { %v626_v8 = vmul.f32 %v3098_v55, %v578_v2  ;;  %v576_v10 = vmul.f32 %v2164_v4, %v3096_v52  ;;  %v558_v6 = vpop.f32.mrb[7].mxu1 }
 0x39e   :  { %v625_v12 = vmul.f32 %v3092_v45, %v577_v3  ;;  %v575_v14 = vmul.f32 %v3096_v52, %v558_v6 }
 0x39f   :  { %v630_v15 = vadd.f32 %v626_v8, %v606_v7  ;;  %v580_v16 = vadd.f32 %v576_v10, %v571_v9  ;;  %v3136_v8 = vpop.permute.xlu0 %679 }
 0x3a0   :  { %v629_v17 = vadd.f32 %v625_v12, %v605_v11  ;;  %v579_v18 = vadd.f32 %v575_v14, %v570_v13  ;;  %v3134_v7 = vpop.permute.xlu1 %702 }
 0x3a1   :  { %v628_v21 = vmul.f32 %v3122_v19, %v580_v16 }
 0x3a2   :  { %v633_v20 = vadd.f32 %v630_v15, %v629_v17  ;;  %v627_v23 = vmul.f32 %v3106_v1, %v579_v18 }
 0x3a3   :  { %v632_v27 = vadd.f32 %v628_v21, %v608_v25  ;;  %v3140_v10 = vpop.permute.xlu0 %684 }
 0x3a4   :  { %v631_v26 = vadd.f32 %v627_v23, %v607_v22  ;;  %v3138_v9 = vpop.permute.xlu1 %707 }
 0x3a6   :  { %v634_v28 = vadd.f32 %v633_v20, %v631_v26 }
 0x3a7   :  { %v3147_v20 = vpop.permute.xlu0 %712 }
 0x3a8   :  { %v635_v29 = vadd.f32 %v634_v28, %v632_v27  ;;  %v3142_v11 = vpop.permute.xlu1 %689 }
 0x3aa   :  { %v636_v30 = vrot.slane %v635_v29, 4 }
 0x3ac   :  { %v637_v31 = vadd.f32 %v636_v30, %v635_v29 }
 0x3ae   :  { %v638_v32 = vrot.slane %v637_v31, 2 }
 0x3b0   :  { %v639_v35 = vadd.f32 %v638_v32, %v637_v31 }
 0x3b2   :  { %v640_v36 = vrot.slane %v639_v35, 1 }
 0x3b4   :  { %v641_v37 = vadd.f32 %v640_v36, %v639_v35 }
 0x3b6   :  { %v643_v39 = vmul.f32 0.03125, %v641_v37 }
 0x3b8   :  { %v646_v43 = vsub.f32 %v631_v26, %v643_v39  ;;  %v644_v44 = vsub.f32 %v629_v17, %v643_v39  ;;  %v645_v46 = vsub.f32 %v630_v15, %v643_v39  ;;  %v647_v48 = vsub.f32 %v632_v27, %v643_v39  ;;  %v3153_v26 = vpop.permute.xlu1 %717 }
 0x3ba   :  { %v648_v50 = vmul.f32 %v644_v44, %v644_v44  ;;  %v649_v51 = vmul.f32 %v645_v46, %v645_v46  ;;  %v650_v53 = vmul.f32 %v646_v43, %v646_v43  ;;  %v651_v56 = vmul.f32 %v647_v48, %v647_v48 }
 0x3bc   :  { %v652_v54 = vadd.f32 %v649_v51, %v648_v50  ;;  %v1050_v50 = vld [vmem:[%s3544_s9 + $0x8] sm:$0xff] }
 0x3be   :  { %v653_v57 = vadd.f32 %v652_v54, %v650_v53  ;;  %v1052_v53 = vld [vmem:[%s3544_s9 + $0x18] sm:$0xff] }
 0x3c0   :  { %v654_v58 = vadd.f32 %v653_v57, %v651_v56  ;;  %v1053_v56 = vld [vmem:[%s3544_s9 + $0x20] sm:$0xff]  ;;  %v1054_v57 = vld [vmem:[%s3544_s9 + $0x28] sm:$0xff] }
 0x3c2   :  { %v655_v60 = vrot.slane %v654_v58, 4 }
 0x3c4   :  { %v656_v59 = vadd.f32 %v655_v60, %v654_v58  ;;  %v3202_v58 = vpack.c.bf16 %v1054_v57, %v1053_v56  ;;  %v1055_v60 = vld [vmem:[%s3544_s9 + $0x30] sm:$0xff] }
 0x3c6   :  { %v657_v61 = vrot.slane %v656_v59, 2 }
 0x3c8   :  { %v658_v62 = vadd.f32 %v657_v61, %v656_v59  ;;  %v1056_v59 = vld [vmem:[%s3544_s9 + $0x38] sm:$0xff] }
 0x3c9   :  { %v3212_v61 = vpack.c.bf16 %v1056_v59, %v1055_v60 }
 0x3ca   :  { %v659_v63 = vrot.slane %v658_v62, 1 }
 0x3cc   :  { %v660_v2 = vadd.f32 %v659_v63, %v658_v62  ;;  %v1057_v62 = vld [vmem:[%s3544_s9 + $0x40] sm:$0xff]  ;;  %v1058_v63 = vld [vmem:[%s3544_s9 + $0x48] sm:$0xff] }
 0x3ce   :  { %v661_v3 = vmul.f32 0.03125, %v660_v2  ;;  %v3222_v2 = vpack.c.bf16 %v1058_v63, %v1057_v62 }
 0x3d0   :  { %v662_v4 = vadd.f32 1e-05, %v661_v3  ;;  %v1059_v3 = vld [vmem:[%s3544_s9 + $0x50] sm:$0xff] }
 0x3d2   :  { %2605 = vrsqrt.f32 %v662_v4  ;;  %v1060_v4 = vld [vmem:[%s3544_s9 + $0x58] sm:$0xff] }
 0x3dc   :  { %v2606_v6 = vpop.eup %2605 }
 0x3dd   :  { %v664_v12 = vmul.f32 %v2606_v6, %v644_v44  ;;  %v665_v13 = vmul.f32 %v2606_v6, %v645_v46  ;;  %v666_v14 = vmul.f32 %v2606_v6, %v646_v43  ;;  %v667_v15 = vmul.f32 %v2606_v6, %v647_v48  ;;  %v1049_v48 = vld [vmem:[%s3544_s9] sm:$0xff] }
 0x3de   :  { %v3182_v51 = vpack.c.bf16 %v1050_v50, %v1049_v48  ;;  %v3232_v6 = vpack.c.bf16 %v1060_v4, %v1059_v3 }
 0x3df   :  { %v692_v16 = vmul.f32 %v3132_v0, %v664_v12  ;;  %v693_v17 = vmul.f32 %v3136_v8, %v665_v13  ;;  %v694_v18 = vmul.f32 %v3140_v10, %v666_v14  ;;  %v695_v21 = vmul.f32 %v3142_v11, %v667_v15  ;;  %v1061_v12 = vld [vmem:[%s3544_s9 + $0x60] sm:$0xff]  ;;  %v1062_v13 = vld [vmem:[%s3544_s9 + $0x68] sm:$0xff]  ;;  %v1063_v15 = vld [vmem:[%s3544_s9 + $0x70] sm:$0xff] }
 0x3e0   :  { %2469 = vmatprep.subr.bf16.mxu0 %v3182_v51  ;;  %v3242_v14 = vpack.c.bf16 %v1062_v13, %v1061_v12 }
 0x3e1   :  { %v720_v22 = vadd.f32 %v3134_v7, %v692_v16  ;;  %v721_v23 = vadd.f32 %v3138_v9, %v693_v17  ;;  %v722_v25 = vadd.f32 %v3147_v20, %v694_v18  ;;  %v723_v29 = vadd.f32 %v3153_v26, %v695_v21  ;;  %v1064_v16 = vld [vmem:[%s3544_s9 + $0x78] sm:$0xff]  ;;  %v3256_v18 = vpop.permute.xlu1 %931  ;;  %v1160_v21 = vld [vmem:[%s3545_s10] sm:$0xff] }
 0x3e2   :  { %v3252_v17 = vpack.c.bf16 %v1064_v16, %v1063_v15 }
 0x3e3   :  { %v3155_v27 = vmax.f32 %v720_v22, 0.0  ;;  %v3157_v28 = vmax.f32 %v721_v23, 0.0  ;;  %v3161_v30 = vmax.f32 %v722_v25, 0.0  ;;  %v3165_v31 = vmax.f32 %v723_v29, 0.0  ;;  %v1161_v22 = vld [vmem:[%s3545_s10 + $0x8] sm:$0xff]  ;;  %v1162_v23 = vld [vmem:[%s3545_s10 + $0x10] sm:$0xff] }
 0x3e4   :  { %v3267_v25 = vpack.c.bf16 %v1161_v22, %v1160_v21  ;;  %v1163_v29 = vld [vmem:[%s3545_s10 + $0x18] sm:$0xff] }
 0x3e5   :  { %2197 = vmatprep.mubr.f32.mxu1 %v3155_v27  ;;  %v915_v48 = vmul.f32 %v3157_v28, %v3094_v49  ;;  %v914_v57 = vmul.f32 %v3155_v27, %v3094_v49  ;;  %v943_v3 = vmul.f32 %v3256_v18, %v3157_v28  ;;  %v917_v12 = vmul.f32 %v3165_v31, %v3094_v49 }
 0x3e6   :  { %2198 = vmatmul.mubr.f32.vlgmr.msra.gmra.mrb[8].mxu1 %v3157_v28  ;;  %2501 = vmatprep.subr.bf16.mxu1 %v3267_v25  ;;  %v916_v22 = vmul.f32 %v3161_v30, %v3094_v49 }
 0x3e7   :  { %2200 = vmatprep.mubr.f32.mxu1 %v3161_v30  ;;  %2503 = vmatpush3.bf16.msra.mxu1 %v3267_v25 }
 0x3ea   :  { %2201 = vmatmul.mubr.f32.gmra.mrb[10].mxu1 %v3165_v31 }
 0x4b9   :  { %v2199_v32 = vpop.f32.mrb[8].mxu1 }
 0x4ba   :  { %v794_v35 = vpop.f32.mrb[9].mxu1  ;;  %v814_v37 = vmul.f32 %v2199_v32, %v3063_v47  ;;  %v3272_v32 = vpack.c.bf16 %v1163_v29, %v1162_v23 }
 0x4bb   :  { %v813_v36 = vmul.f32 %v3063_v47, %v794_v35  ;;  %v1164_v35 = vld [vmem:[%s3545_s10 + $0x20] sm:$0xff] }
 0x4bc   :  { %2505 = vmatprep.subr.bf16.mxu1 %v3272_v32 }
 0x4bd   :  { %v2202_v39 = vpop.f32.mrb[10].mxu1  ;;  %2219 = vmatprep.mubr.msk.f32.mxu0 %vm469_vm1, %v813_v36  ;;  %v1165_v36 = vld [vmem:[%s3545_s10 + $0x28] sm:$0xff]  ;;  %2507 = vmatpush3.bf16.msra.mxu1 %v3272_v32 }
 0x4be   :  { %v804_v43 = vpop.f32.mrb[11].mxu1  ;;  %2220 = vmatmul.mubr.msk.f32.vlgmr.msra.gmra.mrb[8].mxu0 %vm469_vm1, %v814_v37  ;;  %v816_v46 = vmul.f32 %v2202_v39, %v3063_v47  ;;  %v3284_v37 = vpack.c.bf16 %v1165_v36, %v1164_v35  ;;  %v3286_v39 = vpop.permute.xlu1 %947 }
 0x4bf   :  { %v815_v44 = vmul.f32 %v3063_v47, %v804_v43  ;;  %2471 = vmatpush3.bf16.msra.mxu0 %v3182_v51  ;;  %v1051_v47 = vld [vmem:[%s3544_s9 + $0x10] sm:$0xff] }
 0x4c0   :  { %v3192_v54 = vpack.c.bf16 %v1052_v53, %v1051_v47  ;;  %2509 = vmatprep.subr.bf16.mxu1 %v3284_v37 }
 0x4c1   :  { %2222 = vmatprep.mubr.msk.f32.mxu0 %vm469_vm1, %v815_v44  ;;  %v3292_v44 = vpop.permute.xlu0 %951  ;;  %2511 = vmatpush3.bf16.msra.mxu1 %v3284_v37 }
 0x4c2   :  { %2223 = vmatmul.mubr.msk.f32.gmra.mrb[10].mxu0 %vm469_vm1, %v816_v46  ;;  %2473 = vmatprep.subr.bf16.mxu0 %v3192_v54  ;;  %v3290_v43 = vpop.permute.xlu1 %935 }
 0x4c3   :  { %2475 = vmatpush3.bf16.msra.mxu0 %v3192_v54 }
 0x4c4   :  { %2477 = vmatprep.subr.bf16.mxu0 %v3202_v58 }
 0x4c5   :  { %v3300_v56 = vpop.permute.xlu0 %927 }
 0x4c6   :  { %v3298_v53 = vpop.permute.xlu1 %955  ;;  %v942_v16 = vmul.f32 %v3300_v56, %v3155_v27 }
 0x4c7   :  { %2479 = vmatpush3.bf16.msra.mxu0 %v3202_v58 }
 0x4c8   :  { %2481 = vmatprep.subr.bf16.mxu0 %v3212_v61 }
 0x4c9   :  { %v3319_v36 = vpop.permute.xlu0 %939 }
 0x4ca   :  { %v3317_v35 = vpop.permute.xlu1 %959 }
 0x4cb   :  { %2483 = vmatpush3.bf16.msra.mxu0 %v3212_v61 }
 0x4cc   :  { %2485 = vmatprep.subr.bf16.mxu0 %v3222_v2 }
 0x4cf   :  { %2487 = vmatpush3.bf16.msra.mxu0 %v3222_v2 }
 0x4d0   :  { %2489 = vmatprep.subr.bf16.mxu0 %v3232_v6 }
 0x4d3   :  { %2491 = vmatpush3.bf16.msra.mxu0 %v3232_v6 }
 0x4d4   :  { %2493 = vmatprep.subr.bf16.mxu0 %v3242_v14 }
 0x4d7   :  { %2495 = vmatpush3.bf16.msra.mxu0 %v3242_v14 }
 0x4d8   :  { %2497 = vmatprep.subr.bf16.mxu0 %v3252_v17 }
 0x4db   :  { %2499 = vmatpush3.bf16.msra.mxu0 %v3252_v17 }
 0x4dc   :  { %2549 = vmatprep.subr.bf16.mxu0 %v3267_v25 }
 0x591   :  { %v2221_v46 = vpop.f32.mrb[8].mxu0 }
 0x592   :  { %v919_v50 = vmul.f32 %v2221_v46, %v3096_v52  ;;  %v895_v47 = vpop.f32.mrb[9].mxu0 }
 0x593   :  { %v918_v60 = vmul.f32 %v895_v47, %v3096_v52 }
 0x594   :  { %v923_v59 = vadd.f32 %v919_v50, %v915_v48  ;;  %v945_v50 = vmul.f32 %v3319_v36, %v3165_v31 }
 0x595   :  { %v922_v62 = vadd.f32 %v918_v60, %v914_v57  ;;  %v2224_v63 = vpop.f32.mrb[10].mxu0  ;;  %v944_v57 = vmul.f32 %v3290_v43, %v3161_v30 }
 0x596   :  { %v963_v4 = vmul.f32 %v3292_v44, %v923_v59  ;;  %v921_v13 = vmul.f32 %v2224_v63, %v3096_v52  ;;  %v905_v15 = vpop.f32.mrb[11].mxu0 }
 0x597   :  { %v962_v21 = vmul.f32 %v3286_v39, %v922_v62  ;;  %v920_v23 = vmul.f32 %v905_v15, %v3096_v52 }
 0x598   :  { %v967_v29 = vadd.f32 %v963_v4, %v943_v3  ;;  %v925_v28 = vadd.f32 %v921_v13, %v917_v12 }
 0x599   :  { %v966_v46 = vadd.f32 %v962_v21, %v942_v16  ;;  %v924_v48 = vadd.f32 %v920_v23, %v916_v22 }
 0x59a   :  { %v965_v27 = vmul.f32 %v3317_v35, %v925_v28 }
 0x59b   :  { %v970_v47 = vadd.f32 %v967_v29, %v966_v46  ;;  %v964_v60 = vmul.f32 %v3298_v53, %v924_v48 }
 0x59c   :  { %v969_v59 = vadd.f32 %v965_v27, %v945_v50 }
 0x59d   :  { %v968_v62 = vadd.f32 %v964_v60, %v944_v57 }
 0x59f   :  { %v971_v63 = vadd.f32 %v970_v47, %v968_v62 }
 0x5a1   :  { %v972_v3 = vadd.f32 %v971_v63, %v969_v59 }
 0x5a3   :  { %v973_v4 = vrot.slane %v972_v3, 4 }
 0x5a5   :  { %v974_v12 = vadd.f32 %v973_v4, %v972_v3  ;;  %v3327_v4 = vpop.permute.xlu1 %1005 }
 0x5a7   :  { %v975_v13 = vrot.slane %v974_v12, 2 }
 0x5a9   :  { %v976_v15 = vadd.f32 %v975_v13, %v974_v12 }
 0x5ab   :  { %v977_v16 = vrot.slane %v976_v15, 1 }
 0x5ad   :  { %v978_v21 = vadd.f32 %v977_v16, %v976_v15 }
 0x5af   :  { %v979_v22 = vmul.f32 0.03125, %v978_v21 }
 0x5b1   :  { %v980_v31 = vsub.f32 %v966_v46, %v979_v22  ;;  %v981_v23 = vsub.f32 %v967_v29, %v979_v22  ;;  %v982_v28 = vsub.f32 %v968_v62, %v979_v22  ;;  %v983_v42 = vsub.f32 %v969_v59, %v979_v22  ;;  %v3329_v29 = vpop.permute.xlu1 %1025  ;;  %v3331_v59 = vpop.permute.xlu0 %1009 }
 0x5b3   :  { %v984_v40 = vmul.f32 %v980_v31, %v980_v31  ;;  %v985_v34 = vmul.f32 %v981_v23, %v981_v23  ;;  %v986_v30 = vmul.f32 %v982_v28, %v982_v28  ;;  %v987_v48 = vmul.f32 %v983_v42, %v983_v42 }
 0x5b5   :  { %v988_v33 = vadd.f32 %v985_v34, %v984_v40  ;;  %v3333_v62 = vpop.permute.xlu1 %1029  ;;  %v3335_v34 = vpop.permute.xlu0 %1013 }
 0x5b7   :  { %v989_v50 = vadd.f32 %v988_v33, %v986_v30 }
 0x5b9   :  { %v990_v27 = vadd.f32 %v989_v50, %v987_v48  ;;  %v3337_v40 = vpop.permute.xlu1 %1017 }
 0x5bb   :  { %v991_v47 = vrot.slane %v990_v27, 4 }
 0x5bd   :  { %v992_v57 = vadd.f32 %v991_v47, %v990_v27  ;;  %v3342_v27 = vpop.permute.xlu0 %1033 }
 0x5bf   :  { %v993_v60 = vrot.slane %v992_v57, 2 }
 0x5c1   :  { %v994_v63 = vadd.f32 %v993_v60, %v992_v57 }
 0x5c3   :  { %v995_v3 = vrot.slane %v994_v63, 1 }
 0x5c5   :  { %v996_v12 = vadd.f32 %v995_v3, %v994_v63 }
 0x5c7   :  { %v997_v13 = vmul.f32 0.03125, %v996_v12 }
 0x5c9   :  { %v998_v46 = vadd.f32 1e-05, %v997_v13  ;;  %v1166_v13 = vld [vmem:[%s3545_s10 + $0x30] sm:$0xff] }
 0x5cb   :  { %2607 = vrsqrt.f32 %v998_v46  ;;  %v1167_v46 = vld [vmem:[%s3545_s10 + $0x38] sm:$0xff] }
 0x5d5   :  { %v2608_v33 = vpop.eup %2607 }
 0x5d6   :  { %v1002_v15 = vmul.f32 %v2608_v33, %v982_v28  ;;  %v1000_v16 = vmul.f32 %v2608_v33, %v980_v31  ;;  %v1001_v21 = vmul.f32 %v2608_v33, %v981_v23  ;;  %v1003_v22 = vmul.f32 %v2608_v33, %v983_v42  ;;  %v3348_v28 = vpop.permute.xlu1 %1037 }
 0x5d7   :  { %v2512_v33 = vpack.c.bf16 %v1167_v46, %v1166_v13 }
 0x5d8   :  { %v1022_v30 = vmul.f32 %v3335_v34, %v1002_v15  ;;  %v1020_v48 = vmul.f32 %v3327_v4, %v1000_v16  ;;  %v1021_v50 = vmul.f32 %v3331_v59, %v1001_v21  ;;  %v1023_v47 = vmul.f32 %v3337_v40, %v1003_v22 }
 0x5d9   :  { %2513 = vmatprep.subr.bf16.mxu1 %v2512_v33 }
 0x5da   :  { %v1042_v57 = vadd.f32 %v3342_v27, %v1022_v30  ;;  %v1040_v60 = vadd.f32 %v3329_v29, %v1020_v48  ;;  %v1041_v63 = vadd.f32 %v3333_v62, %v1021_v50  ;;  %v1043_v23 = vadd.f32 %v3348_v28, %v1023_v47  ;;  %2515 = vmatpush3.bf16.msra.mxu1 %v2512_v33 }
 0x5db   :  { %2517 = vmatprep.subr.bf16.mxu1 %v3182_v51 }
 0x5dc   :  { %v3350_v31 = vmax.f32 %v1040_v60, 0.0  ;;  %v3352_v42 = vmax.f32 %v1041_v63, 0.0  ;;  %v3355_v3 = vmax.f32 %v1042_v57, 0.0  ;;  %v3360_v12 = vmax.f32 %v1043_v23, 0.0 }
 0x5de   :  { %2257 = vmatprep.mubr.f32.mxu0 %v3350_v31  ;;  %v1268_v60 = vmul.f32 %v3360_v12, %v3094_v49  ;;  %v1277_v13 = vmul.f32 %v3350_v31, %v3088_v38  ;;  %v1280_v38 = vmul.f32 %v3360_v12, %v3128_v24 }
 0x5df   :  { %2258 = vmatmul.mubr.f32.vlgmr.msra.gmra.mrb[12].mxu0 %v3352_v42 }
 0x5e0   :  { %2260 = vmatprep.mubr.f32.mxu0 %v3355_v3  ;;  %2551 = vmatpush3.bf16.msra.mxu0 %v3267_v25  ;;  %v3378_v25 = vld [vmem:[%s3543_s8] ss:$0 sm:$0xff] }
 0x5e1   :  { %2553 = vmatprep.subr.bf16.mxu0 %v3272_v32 }
 0x5e3   :  { %2261 = vmatmul.mubr.f32.gmra.mrb[14].mxu0 %v3360_v12 }
 0x5e4   :  { %2555 = vmatpush3.bf16.msra.mxu0 %v3272_v32 }
 0x5e5   :  { %2557 = vmatprep.subr.bf16.mxu0 %v3284_v37 }
 0x5e8   :  { %2559 = vmatpush3.bf16.msra.mxu0 %v3284_v37 }
 0x5e9   :  { %2561 = vmatprep.subr.bf16.mxu0 %v2512_v33 }
 0x5ec   :  { %2563 = vmatpush3.bf16.msra.mxu0 %v2512_v33  ;;  %v1267_v33 = vmul.f32 %v3355_v3, %v3094_v49 }
 0x6b2   :  { %v2259_v32 = vpop.f32.mrb[12].mxu0 }
 0x6b3   :  { %v1131_v37 = vpop.f32.mrb[13].mxu0  ;;  %v1157_v16 = vmul.f32 %v2259_v32, %v3378_v25 }
 0x6b4   :  { %v1156_v15 = vmul.f32 %v3378_v25, %v1131_v37 }
 0x6b6   :  { %v2262_v21 = vpop.f32.mrb[14].mxu0  ;;  %2279 = vmatprep.mubr.msk.f32.mxu1 %vm469_vm1, %v1156_v15 }
 0x6b7   :  { %v1141_v22 = vpop.f32.mrb[15].mxu0  ;;  %2280 = vmatmul.mubr.msk.f32.vlgmr.msra.gmra.mrb[12].mxu1 %vm469_vm1, %v1157_v16  ;;  %v1159_v48 = vmul.f32 %v2262_v21, %v3378_v25 }
 0x6b8   :  { %v1158_v30 = vmul.f32 %v3378_v25, %v1141_v22  ;;  %2519 = vmatpush3.bf16.msra.mxu1 %v3182_v51  ;;  %v1279_v22 = vmul.f32 %v3355_v3, %v3108_v5 }
 0x6b9   :  { %2521 = vmatprep.subr.bf16.mxu1 %v3192_v54 }
 0x6ba   :  { %2282 = vmatprep.mubr.msk.f32.mxu1 %vm469_vm1, %v1158_v30 }
 0x6bb   :  { %2283 = vmatmul.mubr.msk.f32.gmra.mrb[14].mxu1 %vm469_vm1, %v1159_v48 }
 0x6bc   :  { %2523 = vmatpush3.bf16.msra.mxu1 %v3192_v54  ;;  %v1266_v54 = vmul.f32 %v3352_v42, %v3094_v49 }
 0x6bd   :  { %2525 = vmatprep.subr.bf16.mxu1 %v3202_v58 }
 0x6c0   :  { %2527 = vmatpush3.bf16.msra.mxu1 %v3202_v58 }
 0x6c1   :  { %2529 = vmatprep.subr.bf16.mxu1 %v3212_v61 }
 0x6c4   :  { %2531 = vmatpush3.bf16.msra.mxu1 %v3212_v61 }
 0x6c5   :  { %2533 = vmatprep.subr.bf16.mxu1 %v3222_v2 }
 0x6c8   :  { %2535 = vmatpush3.bf16.msra.mxu1 %v3222_v2  ;;  %v1265_v2 = vmul.f32 %v3350_v31, %v3094_v49 }
 0x6c9   :  { %2537 = vmatprep.subr.bf16.mxu1 %v3232_v6 }
 0x6cc   :  { %2539 = vmatpush3.bf16.msra.mxu1 %v3232_v6 }
 0x6cd   :  { %2541 = vmatprep.subr.bf16.mxu1 %v3242_v14 }
 0x6d0   :  { %2543 = vmatpush3.bf16.msra.mxu1 %v3242_v14  ;;  %v1278_v14 = vmul.f32 %v3352_v42, %v3090_v41 }
 0x6d1   :  { %2545 = vmatprep.subr.bf16.mxu1 %v3252_v17 }
 0x6d4   :  { %2547 = vmatpush3.bf16.msra.mxu1 %v3252_v17 }
 0x78a   :  { %v2281_v51 = vpop.f32.mrb[12].mxu1 }
 0x78b   :  { %v1270_v58 = vmul.f32 %v2281_v51, %v3096_v52  ;;  %v1246_v61 = vpop.f32.mrb[13].mxu1 }
 0x78c   :  { %v1269_v6 = vmul.f32 %v1246_v61, %v3096_v52 }
 0x78d   :  { %v1274_v50 = vadd.f32 %v1270_v58, %v1266_v54 }
 0x78e   :  { %v1273_v47 = vadd.f32 %v1269_v6, %v1265_v2  ;;  %v2284_v57 = vpop.f32.mrb[14].mxu1 }
 0x78f   :  { %v1282_v17 = vmul.f32 %v1274_v50, %v3098_v55  ;;  %v1272_v63 = vmul.f32 %v2284_v57, %v3096_v52  ;;  %v1256_v23 = vpop.f32.mrb[15].mxu1 }
 0x790   :  { %v1281_v46 = vmul.f32 %v1273_v47, %v3092_v45  ;;  %v1271_v32 = vmul.f32 %v1256_v23, %v3096_v52 }
 0x791   :  { %v1286_v37 = vadd.f32 %v1282_v17, %v1278_v14  ;;  %v1276_v41 = vadd.f32 %v1272_v63, %v1268_v60 }
 0x792   :  { %v1285_v15 = vadd.f32 %v1281_v46, %v1277_v13  ;;  %v1275_v55 = vadd.f32 %v1271_v32, %v1267_v33 }
 0x793   :  { %v1284_v21 = vmul.f32 %v1276_v41, %v3122_v19 }
 0x794   :  { %v1289_v16 = vadd.f32 %v1286_v37, %v1285_v15  ;;  %v1283_v30 = vmul.f32 %v1275_v55, %v3106_v1 }
 0x795   :  { %v1288_v48 = vadd.f32 %v1284_v21, %v1280_v38 }
 0x796   :  { %v1287_v45 = vadd.f32 %v1283_v30, %v1279_v22 }
 0x798   :  { %v1290_v51 = vadd.f32 %v1289_v16, %v1287_v45 }
 0x79a   :  { %v1291_v54 = vadd.f32 %v1290_v51, %v1288_v48 }
 0x79c   :  { %v1292_v58 = vrot.slane %v1291_v54, 4 }
 0x79e   :  { %v1293_v61 = vadd.f32 %v1292_v58, %v1291_v54 }
 0x7a0   :  { %v1294_v2 = vrot.slane %v1293_v61, 2 }
 0x7a2   :  { %v1295_v6 = vadd.f32 %v1294_v2, %v1293_v61 }
 0x7a4   :  { %v1296_v50 = vrot.slane %v1295_v6, 1 }
 0x7a6   :  { %v1297_v47 = vadd.f32 %v1296_v50, %v1295_v6 }
 0x7a8   :  { %v1298_v57 = vmul.f32 0.03125, %v1297_v47 }
 0x7aa   :  { %v1301_v19 = vsub.f32 %v1287_v45, %v1298_v57  ;;  %v1299_v14 = vsub.f32 %v1285_v15, %v1298_v57  ;;  %v1300_v17 = vsub.f32 %v1286_v37, %v1298_v57  ;;  %v1302_v5 = vsub.f32 %v1288_v48, %v1298_v57 }
 0x7ac   :  { %v1303_v60 = vmul.f32 %v1299_v14, %v1299_v14  ;;  %v1304_v1 = vmul.f32 %v1300_v17, %v1300_v17  ;;  %v1305_v63 = vmul.f32 %v1301_v19, %v1301_v19  ;;  %v1306_v24 = vmul.f32 %v1302_v5, %v1302_v5 }
 0x7ae   :  { %v1307_v23 = vadd.f32 %v1304_v1, %v1303_v60 }
 0x7b0   :  { %v1308_v13 = vadd.f32 %v1307_v23, %v1305_v63 }
 0x7b2   :  { %v1309_v46 = vadd.f32 %v1308_v13, %v1306_v24 }
 0x7b4   :  { %v1310_v33 = vrot.slane %v1309_v46, 4 }
 0x7b6   :  { %v1311_v32 = vadd.f32 %v1310_v33, %v1309_v46 }
 0x7b8   :  { %v1312_v41 = vrot.slane %v1311_v32, 2 }
 0x7ba   :  { %v1313_v55 = vadd.f32 %v1312_v41, %v1311_v32 }
 0x7bc   :  { %v1314_v16 = vrot.slane %v1313_v55, 1 }
 0x7be   :  { %v1315_v21 = vadd.f32 %v1314_v16, %v1313_v55 }
 0x7c0   :  { %v1316_v22 = vmul.f32 0.03125, %v1315_v21 }
 0x7c2   :  { %v1317_v30 = vadd.f32 1e-05, %v1316_v22 }
 0x7c4   :  { %2609 = vrsqrt.f32 %v1317_v30 }
 0x7ce   :  { %v2610_v38 = vpop.eup %2609 }
 0x7cf   :  { %v1319_v15 = vmul.f32 %v2610_v38, %v1299_v14  ;;  %v1320_v37 = vmul.f32 %v2610_v38, %v1300_v17  ;;  %v1321_v45 = vmul.f32 %v2610_v38, %v1301_v19  ;;  %v1322_v48 = vmul.f32 %v2610_v38, %v1302_v5 }
 0x7d1   :  { %v1323_v51 = vmul.f32 %v1319_v15, %v3132_v0  ;;  %v1324_v54 = vmul.f32 %v1320_v37, %v3136_v8  ;;  %v1325_v58 = vmul.f32 %v1321_v45, %v3140_v10  ;;  %v1326_v61 = vmul.f32 %v1322_v48, %v3142_v11 }
 0x7d3   :  { %v1327_v2 = vadd.f32 %v1323_v51, %v3134_v7  ;;  %v1328_v6 = vadd.f32 %v1324_v54, %v3138_v9  ;;  %v1329_v50 = vadd.f32 %v1325_v58, %v3147_v20  ;;  %v1330_v14 = vadd.f32 %v1326_v61, %v3153_v26 }
 0x7d5   :  { %v1331_v47 = vmax.f32 %v1327_v2, 0.0  ;;  %v1332_v57 = vmax.f32 %v1328_v6, 0.0  ;;  %v1333_v19 = vmax.f32 %v1329_v50, 0.0  ;;  %v1334_v0 = vmax.f32 %v1330_v14, 0.0  ;;  %v1603_v50 = vpop.permute.xlu1 %1602 }
 0x7d7   :  { %2317 = vmatprep.mubr.f32.mxu1 %v1331_v47  ;;  %v1522_v60 = vmul.f32 %v1332_v57, %v3094_v49  ;;  %v1521_v23 = vmul.f32 %v1331_v47, %v3094_v49  ;;  %v1534_v32 = vmul.f32 %v1332_v57, %v3256_v18  ;;  %v1524_v41 = vmul.f32 %v1334_v0, %v3094_v49 }
 0x7d8   :  { %2318 = vmatmul.mubr.f32.vlgmr.msra.gmra.mrb[16].mxu1 %v1332_v57  ;;  %v1533_v21 = vmul.f32 %v1331_v47, %v3300_v56  ;;  %v1523_v30 = vmul.f32 %v1333_v19, %v3094_v49  ;;  %v1536_v18 = vmul.f32 %v1334_v0, %v3319_v36  ;;  %v1535_v54 = vmul.f32 %v1333_v19, %v3290_v43  ;;  %v1598_v43 = vpop.permute.xlu0 %1597 }
 0x7d9   :  { %2320 = vmatprep.mubr.f32.mxu1 %v1333_v19 }
 0x7dc   :  { %2321 = vmatmul.mubr.f32.gmra.mrb[18].mxu1 %v1334_v0 }
 0x8ab   :  { %v2319_v8 = vpop.f32.mrb[16].mxu1 }
 0x8ac   :  { %v1401_v10 = vpop.f32.mrb[17].mxu1  ;;  %v1421_v7 = vmul.f32 %v2319_v8, %v3378_v25  ;;  %v1636_v8 = vpop.permute.xlu1 %1635 }
 0x8ad   :  { %v1420_v11 = vmul.f32 %v3378_v25, %v1401_v10 }
 0x8af   :  { %v2322_v17 = vpop.f32.mrb[18].mxu1  ;;  %2339 = vmatprep.mubr.msk.f32.mxu0 %vm469_vm1, %v1420_v11 }
 0x8b0   :  { %v1411_v9 = vpop.f32.mrb[19].mxu1  ;;  %2340 = vmatmul.mubr.msk.f32.vlgmr.msra.gmra.mrb[16].mxu0 %vm469_vm1, %v1421_v7  ;;  %v1423_v26 = vmul.f32 %v2322_v17, %v3378_v25  ;;  %v1608_v7 = vpop.permute.xlu1 %1607 }
 0x8b1   :  { %v1422_v20 = vmul.f32 %v3378_v25, %v1411_v9 }
 0x8b3   :  { %2342 = vmatprep.mubr.msk.f32.mxu0 %vm469_vm1, %v1422_v20  ;;  %v3459_v20 = vpop.permute.xlu0 %1670 }
 0x8b4   :  { %2343 = vmatmul.mubr.msk.f32.gmra.mrb[18].mxu0 %vm469_vm1, %v1423_v26 }
 0x983   :  { %v2341_v5 = vpop.f32.mrb[16].mxu0 }
 0x984   :  { %v1526_v1 = vmul.f32 %v2341_v5, %v3096_v52  ;;  %v1502_v63 = vpop.f32.mrb[17].mxu0 }
 0x985   :  { %v1525_v24 = vmul.f32 %v1502_v63, %v3096_v52  ;;  %v2695_v63 = vmov 0.0|0.0  }
 0x986   :  { %v1530_v13 = vadd.f32 %v1526_v1, %v1522_v60  ;;  %v1644_v1 = vpop.permute.xlu1 %1643  ;;  %2564 = vmatprep.subr.bf16.mxu0 %v2695_v63 }
 0x987   :  { %v1529_v46 = vadd.f32 %v1525_v24, %v1521_v23  ;;  %v2344_v33 = vpop.f32.mrb[18].mxu0  ;;  %v1640_v24 = vpop.permute.xlu0 %1639 }
 0x988   :  { %v1538_v25 = vmul.f32 %v1530_v13, %v3292_v44  ;;  %v1528_v55 = vmul.f32 %v2344_v33, %v3096_v52  ;;  %v1512_v16 = vpop.f32.mrb[19].mxu0  ;;  %v1650_v13 = vmul.f32 %v1636_v8, %v3350_v31 }
 0x989   :  { %v1537_v22 = vmul.f32 %v1529_v46, %v3286_v39  ;;  %v1527_v38 = vmul.f32 %v1512_v16, %v3096_v52  ;;  %v1651_v46 = vmul.f32 %v1640_v24, %v3352_v42  ;;  %v3580_v16 = vld [vmem:[#allocation12_spill] sm:$0xff] }
 0x98a   :  { %v1542_v15 = vadd.f32 %v1538_v25, %v1534_v32  ;;  %v1532_v37 = vadd.f32 %v1528_v55, %v1524_v41  ;;  %v1675_v25 = vpop.permute.xlu1 %1674  ;;  %v3579_v41 = vld [vmem:[#allocation11_spill] sm:$0xff] }
 0x98b   :  { %v1541_v45 = vadd.f32 %v1537_v22, %v1533_v21  ;;  %v1531_v48 = vadd.f32 %v1527_v38, %v1523_v30  ;;  %v1615_v55 = vmul.f32 %v1598_v43, %v3579_v41  ;;  %v1616_v21 = vmul.f32 %v1603_v50, %v3580_v16  ;;  %v3581_v38 = vld [vmem:[#allocation13_spill] sm:$0xff] }
 0x98c   :  { %v1540_v44 = vmul.f32 %v1532_v37, %v3317_v35  ;;  %v1654_v22 = vadd.f32 %v1651_v46, %v1650_v13  ;;  %v1652_v37 = vmul.f32 %v1644_v1, %v3355_v3 }
 0x98d   :  { %v1545_v51 = vadd.f32 %v1542_v15, %v1541_v45  ;;  %v1539_v58 = vmul.f32 %v1531_v48, %v3298_v53  ;;  %v2697_v48 = vmov 0.0  }
 0x98e   :  { %v1544_v56 = vadd.f32 %v1540_v44, %v1536_v18  ;;  %2353 = vmatprep.mubr.msk.f32.mxu0 %vm2696_vm2, %v2697_v48  ;;  %v1648_v18 = vpop.permute.xlu0 %1647  ;;  %v1619_v44 = vadd.f32 %v1616_v21, %v1615_v55 }
 0x98f   :  { %v1543_v61 = vadd.f32 %v1539_v58, %v1535_v54  ;;  %v1775_v58 = vld [vmem:[%s3551_s16] sm:$0xff]  ;;  %s1919_s16 = sld [smem:[#allocation5 + $0x80]] }
 0x990   :  { %1778 = vperm.xlu0 %2604, %v1775_v58  }
 0x991   :  { %v1546_v39 = vadd.f32 %v1545_v51, %v1543_v61  ;;  %v1655_v51 = vadd.f32 %v1654_v22, %v1652_v37 }
 0x993   :  { %v1547_v2 = vadd.f32 %v1546_v39, %v1544_v56  ;;  %v1653_v39 = vmul.f32 %v1648_v18, %v3360_v12 }
 0x995   :  { %v1548_v49 = vrot.slane %v1547_v2, 4 }
 0x997   :  { %v1549_v6 = vadd.f32 %v1548_v49, %v1547_v2  ;;  %v3582_v49 = vld [vmem:[#allocation14_spill] sm:$0xff] }
 0x999   :  { %v1550_v52 = vrot.slane %v1549_v6, 2 }
 0x99b   :  { %v1551_v47 = vadd.f32 %v1550_v52, %v1549_v6  ;;  %v1656_v52 = vadd.f32 %v1655_v51, %v1653_v39 }
 0x99d   :  { %v1552_v57 = vrot.slane %v1551_v47, 1 }
 0x99f   :  { %v1553_v14 = vadd.f32 %v1552_v57, %v1551_v47  ;;  %v1657_v57 = vrot.slane %v1656_v52, 4 }
 0x9a1   :  { %v1554_v36 = vmul.f32 0.03125, %v1553_v14  ;;  %v1658_v8 = vadd.f32 %v1657_v57, %v1656_v52  ;;  %v1719_v57 = vstv %s1922_s7 }
 0x9a3   :  { %v1555_v0 = vsub.f32 %v1541_v45, %v1554_v36  ;;  %v1556_v35 = vsub.f32 %v1542_v15, %v1554_v36  ;;  %v1557_v10 = vsub.f32 %v1543_v61, %v1554_v36  ;;  %v1558_v11 = vsub.f32 %v1544_v56, %v1554_v36  ;;  %v1613_v56 = vpop.permute.xlu1 %1612 }
 0x9a4   :  { %v1617_v15 = vmul.f32 %v1608_v7, %v3581_v38  ;;  %v1618_v6 = vmul.f32 %v1613_v56, %v3582_v49 }
 0x9a5   :  { %v1559_v19 = vmul.f32 %v1555_v0, %v1555_v0  ;;  %v1560_v53 = vmul.f32 %v1556_v35, %v1556_v35  ;;  %v1561_v17 = vmul.f32 %v1557_v10, %v1557_v10  ;;  %v1562_v26 = vmul.f32 %v1558_v11, %v1558_v11 }
 0x9a6   :  { %v1620_v61 = vadd.f32 %v1619_v44, %v1617_v15 }
 0x9a7   :  { %v1563_v9 = vadd.f32 %v1560_v53, %v1559_v19  ;;  %v1659_v19 = vrot.slane %v1658_v8, 2  ;;  %v1679_v13 = vpop.permute.xlu1 %1678 }
 0x9a8   :  { %v1621_v47 = vadd.f32 %v1620_v61, %v1618_v6 }
 0x9a9   :  { %v1564_v5 = vadd.f32 %v1563_v9, %v1561_v17  ;;  %v1660_v24 = vadd.f32 %v1659_v19, %v1658_v8  ;;  %v1705_v8 = vstv %s1704_s12 }
 0x9aa   :  { %v1622_v14 = vrot.slane %v1621_v47, 4 }
 0x9ab   :  { %v1565_v60 = vadd.f32 %v1564_v5, %v1562_v26 }
 0x9ac   :  { %v1623_v36 = vadd.f32 %v1622_v14, %v1621_v47  ;;  %v1708_v47 = vstv %s1919_s16 }
 0x9ad   :  { %v1566_v23 = vrot.slane %v1565_v60, 4 }
 0x9ae   :  { %v1624_v26 = vrot.slane %v1623_v36, 2 }
 0x9af   :  { %v1567_v33 = vadd.f32 %v1566_v23, %v1565_v60 }
 0x9b1   :  { %v1568_v32 = vrot.slane %v1567_v33, 2 }
 0x9b3   :  { %v1569_v30 = vadd.f32 %v1568_v32, %v1567_v33 }
 0x9b5   :  { %v1570_v45 = vrot.slane %v1569_v30, 1 }
 0x9b7   :  { %v1571_v54 = vadd.f32 %v1570_v45, %v1569_v30 }
 0x9b9   :  { %v1572_v2 = vmul.f32 0.03125, %v1571_v54 }
 0x9bb   :  { %v1573_v50 = vadd.f32 1e-05, %v1572_v2 }
 0x9bd   :  { %2611 = vrsqrt.f32 %v1573_v50 }
 0x9c7   :  { %v2612_v43 = vpop.eup %2611 }
 0x9c8   :  { %v1575_v53 = vmul.f32 %v2612_v43, %v1555_v0  ;;  %v1576_v7 = vmul.f32 %v2612_v43, %v1556_v35  ;;  %v1577_v17 = vmul.f32 %v2612_v43, %v1557_v10  ;;  %v1578_v9 = vmul.f32 %v2612_v43, %v1558_v11 }
 0x9c9   :  { %v1661_v10 = vrot.slane %v1660_v24, 1  ;;  %v1730_v43 = vstv %s1925_s30 }
 0x9ca   :  { %v1579_v5 = vmul.f32 %v1575_v53, %v3327_v4  ;;  %v1580_v60 = vmul.f32 %v1576_v7, %v3331_v59  ;;  %v1581_v1 = vmul.f32 %v1577_v17, %v3335_v34  ;;  %v1582_v23 = vmul.f32 %v1578_v9, %v3337_v40 }
 0x9cb   :  { %v1625_v4 = vadd.f32 %v1624_v26, %v1623_v36  ;;  %v1662_v21 = vadd.f32 %v1661_v10, %v1660_v24  ;;  %v1716_v36 = vstv %s1921_s13  ;;  %v1727_v53 = vstv %s1924_s22 }
 0x9cc   :  { %v3478_v46 = vadd.f32 %v1579_v5, %v3329_v29  ;;  %v3481_v33 = vadd.f32 %v1580_v60, %v3333_v62  ;;  %v3484_v0 = vadd.f32 %v1581_v1, %v3342_v27  ;;  %v3487_v35 = vadd.f32 %v1582_v23, %v3348_v28  ;;  %v1683_v28 = vpop.permute.xlu1 %1682 }
 0x9cd   :  { %v1626_v11 = vrot.slane %v1625_v4, 1  ;;  %v1917_v45 = vmul.f32 -1.442695, %v1662_v21  ;;  %v1712_v17 = vstv %s1920_s20  ;;  %v1723_v9 = vstv %s1923_s2 }
 0x9ce   :  { %v1587_v59 = vmax.f32 %v3478_v46, 0.0  ;;  %v1588_v34 = vmax.f32 %v3481_v33, 0.0  ;;  %v1589_v40 = vmax.f32 %v3484_v0, 0.0  ;;  %v1590_v27 = vmax.f32 %v3487_v35, 0.0  ;;  %v1774_v33 = vld [vmem:[%s3550_s15] sm:$0xff]  ;;  %s2698_s15 = smov [#allocation7]  }
 0x9cf   :  { %v1627_v15 = vadd.f32 %v1626_v11, %v1625_v4  ;;  %2613 = vpow2.f32 %v1917_v45  ;;  %v1734_v26 = vstv %s1926_s23  ;;  %s1879_s11 = sshll.u32 %s2698_s15, 4  ;;  %s1880_s11 = int_to_ptr.vmem [resolvable:$true] %s1879_s11 }
 0x9d0   :  { %v1685_v29 = vmul.f32 %v3459_v20, %v1587_v59  ;;  %v1686_v62 = vmul.f32 %v1675_v25, %v1588_v34  ;;  %v1687_v32 = vmul.f32 %v1679_v13, %v1589_v40  ;;  %v1688_v30 = vmul.f32 %v1683_v28, %v1590_v27  ;;  %s2661_s17 = scalar_lea.vmem %s1880_s11, 128  ;;  %p2666_p11 = scmp.lt.s32.totalorder %s1880_s11, %s1880_s11 }
 0x9d1   :  { %v1916_v48 = vmul.f32 -1.442695, %v1627_v15  ;;  %p2662_p10 = scmp.ne.s32.totalorder %s1880_s11, %s2661_s17  ;;  %p2667_p12 = scmp.lt.s32.totalorder %s2661_s17, %s2661_s17 }
 0x9d2   :  { %v1689_v55 = vadd.f32 %v1686_v62, %v1685_v29 }
 0x9d3   :  { %2615 = vpow2.f32 %v1916_v48  ;;  %p2668_p13 = por %p2667_p12, %p2666_p11 }
 0x9d4   :  { %v1690_v22 = vadd.f32 %v1689_v55, %v1687_v32 }
 0x9d5   :  { %p2669_p0 = pnand %p2668_p13, %p2662_p10 }
 0x9d6   :  { %v1691_v37 = vadd.f32 %v1690_v22, %v1688_v30 }
 0x9d8   :  { %v1692_v20 = vrot.slane %v1691_v37, 4 }
 0x9d9   :  { %v2614_v56 = vpop.eup %2613 }
 0x9da   :  { %v1693_v18 = vadd.f32 %v1692_v20, %v1691_v37  ;;  %v1666_v39 = vadd.f32 1.0, %v2614_v56 }
 0x9dc   :  { %v1694_v25 = vrot.slane %v1693_v18, 2 }
 0x9dd   :  { %v2616_v61 = vpop.eup %2615 }
 0x9de   :  { %v1695_v44 = vadd.f32 %v1694_v25, %v1693_v18  ;;  %v1631_v2 = vadd.f32 1.0, %v2616_v61 }
 0x9e0   :  { %v1696_v51 = vrot.slane %v1695_v44, 1 }
 0x9e2   :  { %v1697_v54 = vadd.f32 %v1696_v51, %v1695_v44 }
 0x9e4   :  { %v1918_v58 = vmul.f32 -1.442695, %v1697_v54 }
 0x9e6   :  { %2617 = vpow2.f32 %v1918_v58 }
 0x9e7   :  { %2619 = vrcp.f32 %v1666_v39 }
 0x9e8   :  { %2621 = vrcp.f32 %v1631_v2 }
 0x9f0   :  { %v2618_v6 = vpop.eup %2617 }
 0x9f1   :  { %v1701_v52 = vadd.f32 1.0, %v2618_v6  ;;  %v2620_v50 = vpop.eup %2619 }
 0x9f2   :  { %v2622_v14 = vpop.eup %2621  ;;  %v1709_v19 = vmul.f32 %v2620_v50, %v1708_v47  ;;  %v1720_v7 = vmul.f32 %v2620_v50, %v1719_v57  ;;  %v1731_v1 = vmul.f32 %v2620_v50, %v1730_v43 }
 0x9f3   :  { %2623 = vrcp.f32 %v1701_v52  ;;  %v1706_v5 = vmul.f32 %v2622_v14, %v1705_v8  ;;  %v1717_v60 = vmul.f32 %v2622_v14, %v1716_v36  ;;  %v1728_v13 = vmul.f32 %v2622_v14, %v1727_v53 }
 0x9f5   :  { %v1710_v24 = vadd.f32 %v1709_v19, %v1706_v5  ;;  %v1721_v10 = vadd.f32 %v1720_v7, %v1717_v60  ;;  %v1732_v32 = vadd.f32 %v1731_v1, %v1728_v13 }
 0x9fd   :  { %v2624_v23 = vpop.eup %2623 }
 0x9fe   :  { %v1713_v4 = vmul.f32 %v2624_v23, %v1712_v17  ;;  %v1724_v29 = vmul.f32 %v2624_v23, %v1723_v9  ;;  %v1735_v62 = vmul.f32 %v2624_v23, %v1734_v26 }
 0xa00   :  { %v1714_v11 = vadd.f32 %v1713_v4, %v1710_v24  ;;  %v1725_v28 = vadd.f32 %v1724_v29, %v1721_v10  ;;  %v1736_v55 = vadd.f32 %v1735_v62, %v1732_v32 }
 0xa02   :  { %v1737_v21 = vmax.f32 %v1714_v11, %v1725_v28 }
 0xa04   :  { %v1738_v22 = vmax.f32 %v1737_v21, %v1736_v55 }
 0xa06   :  { %v1739_v30 = vsub.f32 %v1714_v11, %v1738_v22  ;;  %v1742_v15 = vsub.f32 %v1725_v28, %v1738_v22  ;;  %v1745_v37 = vsub.f32 %v1736_v55, %v1738_v22 }
 0xa08   :  { %v1740_v45 = vmul.f32 1.442695, %v1739_v30  ;;  %v1743_v20 = vmul.f32 1.442695, %v1742_v15  ;;  %v1746_v48 = vmul.f32 1.442695, %v1745_v37 }
 0xa0a   :  { %2625 = vpow2.f32 %v1740_v45 }
 0xa0b   :  { %2627 = vpow2.f32 %v1743_v20 }
 0xa0c   :  { %2629 = vpow2.f32 %v1746_v48 }
 0xa0f   :  { %v1779_v35 = vpop.permute.xlu0 %1778 }
 0xa14   :  { %v2626_v18 = vpop.eup %2625 }
 0xa15   :  { %v2628_v25 = vpop.eup %2627 }
 0xa16   :  { %v1748_v44 = vadd.f32 %v2628_v25, %v2626_v18  ;;  %v2630_v51 = vpop.eup %2629 }
 0xa18   :  { %v1749_v54 = vadd.f32 %v2630_v51, %v1748_v44 }
 0xa1a   :  { %2631 = vrcp.f32 %v1749_v54 }
 0xa24   :  { %v2632_v58 = vpop.eup %2631 }
 0xa25   :  { %v1751_v56 = vmul.f32 %v2632_v58, %v2626_v18  ;;  %v1756_v61 = vmul.f32 %v2632_v58, %v2628_v25  ;;  %v1765_v39 = vmul.f32 %v2632_v58, %v2630_v51 }
 0xa27   :  { %v1755_v2 = vmul.f32 %v1751_v56, %v3582_v49  ;;  %v1760_v6 = vmul.f32 %v1756_v61, %v3360_v12  ;;  %v1752_v52 = vmul.f32 %v1751_v56, %v3579_v41  ;;  %v1753_v50 = vmul.f32 %v1751_v56, %v3580_v16 }
 0xa28   :  { %v1757_v47 = vmul.f32 %v1756_v61, %v3350_v31  ;;  %v1758_v57 = vmul.f32 %v1756_v61, %v3352_v42  ;;  %v1766_v14 = vmul.f32 %v1765_v39, %v1587_v59  ;;  %v1754_v8 = vmul.f32 %v1751_v56, %v3581_v38 }
 0xa29   :  { %v1759_v36 = vmul.f32 %v1756_v61, %v3355_v3  ;;  %v1764_v43 = vadd.f32 %v1760_v6, %v1755_v2  ;;  %v1767_v12 = vmul.f32 %v1765_v39, %v1588_v34  ;;  %v1769_v16 = vmul.f32 %v1765_v39, %v1590_v27 }
 0xa2a   :  { %v1761_v19 = vadd.f32 %v1757_v47, %v1752_v52  ;;  %v1762_v49 = vadd.f32 %v1758_v57, %v1753_v50  ;;  %v1768_v42 = vmul.f32 %v1765_v39, %v1589_v40 }
 0xa2b   :  { %v1763_v41 = vadd.f32 %v1759_v36, %v1754_v8  ;;  %v1773_v46 = vadd.f32 %v1769_v16, %v1764_v43 }
 0xa2c   :  { %v1770_v31 = vadd.f32 %v1766_v14, %v1761_v19  ;;  %v1771_v53 = vadd.f32 %v1767_v12, %v1762_v49 }
 0xa2d   :  { %v1772_v38 = vadd.f32 %v1768_v42, %v1763_v41 }
 0xa2e   :  { %v2565_v59 = vpack.c.bf16 %v1771_v53, %v1770_v31 }
 0xa2f   :  { %v2568_v3 = vpack.c.bf16 %v1773_v46, %v1772_v38 }
 0xa30   :  { %2566 = vmatpush3.bf16.msra.mxu0 %v2565_v59 }
 0xa31   :  { %2567 = vmatprep.subr.bf16.mxu0 %v2695_v63 }
 0xa34   :  { %2569 = vmatpush3.bf16.msra.mxu0 %v2568_v3 }
 0xa37   :  { %2354 = vmatmul.mubr.msk.f32.vlgmr.msra.gmra.mrb[20].mxu0 %vm120_vm0, %v1774_v33 }
 0xb0a   :  { %v1850_v34 = vpop.f32.mrb[20].mxu0 }
 0xb0b   :  { %v1851_v27 = vadd.f32 %v1850_v34, %v1779_v35  ;;  %v2355_v7 = vpop.f32.mrb[21].mxu0 }
 0xb0d   :  { %v1854_v0 = vrot.slane %v1851_v27, 4 }
 0xb0f   :  { %v1855_v40 = vmax.f32 %v1851_v27, %v1854_v0 }
 0xb11   :  { %v1856_v17 = vrot.slane %v1855_v40, 2 }
 0xb13   :  { %v1857_v9 = vmax.f32 %v1855_v40, %v1856_v17 }
 0xb15   :  { %v1858_v26 = vrot.slane %v1857_v9, 1 }
 0xb17   :  { %v1859_v5 = vmax.f32 %v1857_v9, %v1858_v26 }
 0xb19   :  { %v1860_v60 = vsub.f32 %v1851_v27, %v1859_v5 }
 0xb1b   :  { %v1861_v63 = vmul.f32 1.442695, %v1860_v60 }
 0xb1d   :  { %2633 = vpow2.f32 %v1861_v63 }
 0xb27   :  { %v2634_v1 = vpop.eup %2633 }
 0xb28   :  { %v1863_v23 = vrot.slane %v2634_v1, 4 }
 0xb2a   :  { %v1864_v24 = vadd.f32 %v2634_v1, %v1863_v23 }
 0xb2c   :  { %v1865_v13 = vrot.slane %v1864_v24, 2 }
 0xb2e   :  { %v1866_v4 = vadd.f32 %v1865_v13, %v1864_v24 }
 0xb30   :  { %v1867_v10 = vrot.slane %v1866_v4, 1 }
 0xb32   :  { %v1868_v29 = vadd.f32 %v1867_v10, %v1866_v4 }
 0xb34   :  { %2635 = vlog2.f32 %v1868_v29 }
 0xb3e   :  { %v2636_v62 = vpop.eup %2635 }
 0xb3f   :  { %v1870_v11 = vmul.f32 0.6931472, %v2636_v62 }
 0xb41   :  { %v1871_v28 = vsub.f32 %v1860_v60, %v1870_v11 }
 0xb43   :  { %1872 = vst [vmem:[#allocation7] sm:$0xff] %v1871_v28 }
 0xb44   :  { %2672 = shalt.err (!%p2669_p0)
}
 0xb45   :  { %s2673_s9 = scalar_lea.hbm %s3554_s19, 128 }
 0xb46   :  { %p2674_p1 = scmp.ne.s32.totalorder %s3554_s19, %s2673_s9  ;;  %p2677_p2 = scmp.lt.u32.totalorder %s2673_s9, %s3554_s19 }
 0xb48   :  { %p2679_p3 = pnand %p2677_p2, %p2674_p1 }
 0xb4a   :  { %2682 = shalt.err (!%p2679_p3)
}
 0xb4b   :  { %1882 = dma.vmem_to_hbm [thread:$0]  %s1880_s11, 128, %s3554_s19, [#allocation3]  }
 0xb4c   :  { %2687 = dma.done.wait [#allocation3], 128  }
 0xb4d   :  { %2688 = vsyncadd [#allocation3], 4294967168 }
 0xb4e   :  { %1886 = vsyncpa [#allocation3], 1 }
 0xb4f   :  { %1887 = vsyncpa [#allocation4], 1 }
 0xb50   :  { %1888 = vsyncpa [#allocation6], 1 }

</bundles_post_ra>
